<compile_context>
chip_gen: v5e
topology: v5e:2x2
jax: 0.10.0
libtpu: 0.0.40
codegen_flags: <defaults>
</compile_context>

<pallas_src>
import jax
import jax.numpy as jnp
from jax import lax
from jax.experimental import pallas as pl
from jax.experimental.pallas import tpu as pltpu


# ---------------------------------------------------------------------------
# helpers
# ---------------------------------------------------------------------------
def _round_up(x: int, m: int) -> int:
    return (x + m - 1) // m * m


def _time_chunk(T: int, Bp: int, G: int, budget_bytes: int = 2 << 20,
                cap: int = 32) -> int:
    """Largest divisor of T that keeps the (Tt, Bp, G) f32 chunk under budget."""
    per_step = Bp * G * 4
    max_steps = max(1, min(cap, budget_bytes // max(per_step, 1)))
    for d in range(min(T, max_steps), 0, -1):
        if T % d == 0:
            return d
    return 1


def _q(a):
    """bf16 round-trip — mirrors the kernel's MXU input casting (reference only)."""
    return a.astype(jnp.bfloat16).astype(jnp.float32)


# ---------------------------------------------------------------------------
# kernel 1: input projection (parallel over row tiles)
#   gates_x = x_rows @ W_ih^T + (b_ih + b_hh)
# ---------------------------------------------------------------------------
def _in_proj_kernel(x_ref, wih_ref, b_ref, g_ref):
    # x_ref: (RB, D) bf16 ; wih_ref: (D, 4H) bf16 ; b_ref: (1, 4H) f32
    g_ref[...] = (jnp.dot(x_ref[...], wih_ref[...],
                          preferred_element_type=jnp.float32)
                  + b_ref[...]).astype(g_ref.dtype)


# ---------------------------------------------------------------------------
# kernel 2: sequential LSTM recurrence (time loop inside the kernel)
# ---------------------------------------------------------------------------
def _lstm_recurrence_kernel(gx_ref, whh_ref, hT_ref, h_ref, c_ref):
    # gx_ref : (Tt, Bp, 4H) f32   precomputed input gates (bias included)
    # whh_ref: (H, 4H)      bf16  hidden->gates weight (transposed)
    # hT_ref : (Bp, H)      f32   output: final hidden state
    # h_ref, c_ref: (Bp, H) f32   recurrent state scratch (persists across grid)
    tb = pl.program_id(0)
    H = h_ref.shape[-1]
    Tt = gx_ref.shape[0]

    @pl.when(tb == 0)
    def _():
        h_ref[...] = jnp.zeros_like(h_ref)
        c_ref[...] = jnp.zeros_like(c_ref)

    def step(t, carry):
        h, c = carry
        # only the recurrent matmul stays in the loop (bf16 MXU, f32 accumulate)
        gates = gx_ref[t] + jnp.dot(h.astype(jnp.bfloat16), whh_ref[...],
                                    preferred_element_type=jnp.float32)
        i = jax.nn.sigmoid(gates[:, 0 * H:1 * H])
        f = jax.nn.sigmoid(gates[:, 1 * H:2 * H])
        g = jnp.tanh(gates[:, 2 * H:3 * H])
        o = jax.nn.sigmoid(gates[:, 3 * H:4 * H])
        c = f * c + i * g
        h = o * jnp.tanh(c)
        return (h, c)

    hT, cT = lax.fori_loop(0, Tt, step, (h_ref[...], c_ref[...]), unroll=True)
    h_ref[...] = hT
    c_ref[...] = cT
    # Written every grid step; output block index is constant -> single writeback.
    hT_ref[...] = hT


# ---------------------------------------------------------------------------
# kernel 3: final Linear (dropout is identity in eval mode)
# ---------------------------------------------------------------------------
def _fc_kernel(h_ref, wfc_ref, bfc_ref, out_ref):
    out_ref[...] = (jnp.dot(h_ref[...].astype(jnp.bfloat16), wfc_ref[...],
                            preferred_element_type=jnp.float32)
                    + bfc_ref[...]).astype(out_ref.dtype)


# ---------------------------------------------------------------------------
# wrapper
# ---------------------------------------------------------------------------
def lstm_forward(x, params):
    """x: (B, T, D) f32, batch_first like the PyTorch module."""
    B, T, D = x.shape
    w_ih, w_hh, b_ih, b_hh, w_fc, b_fc = (
        params["w_ih"], params["w_hh"], params["b_ih"],
        params["b_hh"], params["w_fc"], params["b_fc"])
    H = w_hh.shape[1]
    O = w_fc.shape[0]
    G = 4 * H

    Bp = _round_up(B, 8)          # pad batch to a sublane multiple
    Op = _round_up(O, 128)        # pad FC output to a lane-dense width

    # ---- layout / dtype prep (glue, plain XLA) ----
    wih_t = jnp.transpose(w_ih).astype(jnp.bfloat16)          # (D, 4H)
    whh_t = jnp.transpose(w_hh).astype(jnp.bfloat16)          # (H, 4H)
    bias = (b_ih + b_hh)[None, :].astype(jnp.float32)         # (1, 4H)
    wfc_p = jnp.zeros((H, Op), jnp.bfloat16).at[:, :O].set(
        jnp.transpose(w_fc).astype(jnp.bfloat16))             # (H, Op)
    bfc_p = jnp.zeros((1, Op), jnp.float32).at[:, :O].set(b_fc[None, :])

    x_tm = jnp.transpose(x, (1, 0, 2))                         # (T, B, D)
    x_tm = jnp.pad(x_tm, ((0, 0), (0, Bp - B), (0, 0))).astype(jnp.bfloat16)

    rows = T * Bp
    RB = min(_round_up(rows, 16), 512)                         # row tile
    rows_p = _round_up(rows, RB)
    x_flat = jnp.pad(x_tm.reshape(rows, D), ((0, rows_p - rows), (0, 0)))

    # ---- kernel 1: hoisted input projection (parallel matmul over T*Bp rows) ----
    gates_flat = pl.pallas_call(
        _in_proj_kernel,
        out_shape=jax.ShapeDtypeStruct((rows_p, G), jnp.float32),
        grid=(rows_p // RB,),
        in_specs=[
            pl.BlockSpec((RB, D), lambda r: (r, 0)),
            pl.BlockSpec((D, G), lambda r: (0, 0)),
            pl.BlockSpec((1, G), lambda r: (0, 0)),
        ],
        out_specs=pl.BlockSpec((RB, G), lambda r: (r, 0)),
        compiler_params=pltpu.CompilerParams(
            dimension_semantics=("parallel",)),
    )(x_flat, wih_t, bias)
    gates_x = gates_flat[:rows].reshape(T, Bp, G)              # (T, Bp, 4H)

    # ---- kernel 2: sequential recurrence, time-chunked grid ----
    Tt = _time_chunk(T, Bp, G)
    hT = pl.pallas_call(
        _lstm_recurrence_kernel,
        out_shape=jax.ShapeDtypeStruct((Bp, H), jnp.float32),
        grid=(T // Tt,),
        in_specs=[
            pl.BlockSpec((Tt, Bp, G), lambda tb: (tb, 0, 0)),
            pl.BlockSpec((H, G), lambda tb: (0, 0)),
        ],
        out_specs=pl.BlockSpec((Bp, H), lambda tb: (0, 0)),
        scratch_shapes=[pltpu.VMEM((Bp, H), jnp.float32),      # h
                        pltpu.VMEM((Bp, H), jnp.float32)],     # c
        compiler_params=pltpu.CompilerParams(
            dimension_semantics=("arbitrary",)),               # true recurrence
    )(gates_x, whh_t)

    # ---- kernel 3: Dropout(eval, identity) + Linear on h_T ----
    out_p = pl.pallas_call(
        _fc_kernel,
        out_shape=jax.ShapeDtypeStruct((Bp, Op), jnp.float32),
        grid=(1,),
        in_specs=[
            pl.BlockSpec((Bp, H), lambda i: (0, 0)),
            pl.BlockSpec((H, Op), lambda i: (0, 0)),
            pl.BlockSpec((1, Op), lambda i: (0, 0)),
        ],
        out_specs=pl.BlockSpec((Bp, Op), lambda i: (0, 0)),
    )(hT, wfc_p, bfc_p)

    return out_p[:B, :O]


# ---------------------------------------------------------------------------
# pure-JAX reference (mirrors nn.LSTM(batch_first=True) + Linear, with the
# same bf16 rounding of matmul inputs that the kernels use on the MXU)
# ---------------------------------------------------------------------------
def lstm_reference(x, params):
    w_ih, w_hh, b_ih, b_hh, w_fc, b_fc = (
        params["w_ih"], params["w_hh"], params["b_ih"],
        params["b_hh"], params["w_fc"], params["b_fc"])
    B, T, D = x.shape
    H = w_hh.shape[1]

    wih, whh, wfc = _q(w_ih), _q(w_hh), _q(w_fc)
    bias = b_ih + b_hh
    xq = _q(x)

    h = jnp.zeros((B, H), jnp.float32)
    c = jnp.zeros((B, H), jnp.float32)

    def step(carry, x_t):
        h, c = carry
        gates = x_t @ wih.T + bias + _q(h) @ whh.T
        i = jax.nn.sigmoid(gates[:, 0 * H:1 * H])
        f = jax.nn.sigmoid(gates[:, 1 * H:2 * H])
        g = jnp.tanh(gates[:, 2 * H:3 * H])
        o = jax.nn.sigmoid(gates[:, 3 * H:4 * H])
        c = f * c + i * g
        h = o * jnp.tanh(c)
        return (h, c), None

    (h, c), _ = lax.scan(step, (h, c), jnp.transpose(xq, (1, 0, 2)))
    return _q(h) @ wfc.T + b_fc


def init_params(key, input_size, hidden_size, output_size):
    ks = jax.random.split(key, 6)
    k = 1.0 / jnp.sqrt(hidden_size)
    u = lambda kk, shape: jax.random.uniform(kk, shape, jnp.float32, -k, k)
    return {
        "w_ih": u(ks[0], (4 * hidden_size, input_size)),
        "w_hh": u(ks[1], (4 * hidden_size, hidden_size)),
        "b_ih": u(ks[2], (4 * hidden_size,)),
        "b_hh": u(ks[3], (4 * hidden_size,)),
        "w_fc": u(ks[4], (output_size, hidden_size)),
        "b_fc": u(ks[5], (output_size,)),
    }


if __name__ == "__main__":
    B, T, D = 2, 8, 16          # batch, seq_len, input_size
    H, O = 128, 10              # hidden_size (module default), output_size

    key = jax.random.PRNGKey(0)
    kx, kp = jax.random.split(key)
    x = jax.random.normal(kx, (B, T, D), jnp.float32)
    params = init_params(kp, D, H, O)

    fwd = jax.jit(lstm_forward)
    out = jax.block_until_ready(fwd(x, params))

    ref = lstm_reference(x, params)
    assert out.shape == (B, O)
    assert jnp.allclose(out, ref, atol=2e-3, rtol=2e-3), "mismatch vs reference"

    print("KERNEL_OK")
</pallas_src>

<mosaic_0001>
module attributes {stable_mosaic.version = 11 : i64} {
  func.func @_lstm_recurrence_kernel(%arg0: i32, %arg1: memref<8x8x512xf32, #tpu.memory_space<vmem>>, %arg2: memref<128x512xbf16, #tpu.memory_space<vmem>>, %arg3: memref<8x128xf32, #tpu.memory_space<vmem>>, %arg4: memref<8x128xf32, #tpu.memory_space<vmem>>, %arg5: memref<8x128xf32, #tpu.memory_space<vmem>>) attributes {dimension_semantics = [#tpu.dimension_semantics<arbitrary>], iteration_bounds = array<i64: 1>, scalar_prefetch = 0 : i64, scratch_operands = 2 : i64, tpu.core_type = #tpu.core_type<tc>, window_params = [{transform_indices = @transform_0, window_bounds = array<i64: 8, 8, 512>}, {pipeline_mode = #tpu.pipeline_mode<synchronous>, transform_indices = @transform_1, window_bounds = array<i64: 128, 512>}, {pipeline_mode = #tpu.pipeline_mode<synchronous>, transform_indices = @transform_2, window_bounds = array<i64: 8, 128>}]} {
    %c0_i32 = arith.constant 0 : i32
    %0 = arith.cmpi eq, %arg0, %c0_i32 : i32
    %1 = arith.extui %0 : i1 to i32
    %c0_i32_0 = arith.constant 0 : i32
    %2 = arith.cmpi ne, %1, %c0_i32_0 : i32
    scf.if %2 {
      %cst_74 = arith.constant 0.000000e+00 : f32
      %264 = vector.broadcast %cst_74 : f32 to vector<8x128xf32>
      %c0_75 = arith.constant 0 : index
      %c0_76 = arith.constant 0 : index
      %265 = vector.load %arg4[%c0_75, %c0_76] : memref<8x128xf32, #tpu.memory_space<vmem>>, vector<8x128xf32>
      tpu.vector_store %arg4[%c0_75, %c0_76], %264 {strides = array<i32>} : memref<8x128xf32, #tpu.memory_space<vmem>>, vector<8x128xf32>,
      %cst_77 = arith.constant 0.000000e+00 : f32
      %266 = vector.broadcast %cst_77 : f32 to vector<8x128xf32>
      %c0_78 = arith.constant 0 : index
      %c0_79 = arith.constant 0 : index
      %267 = vector.load %arg5[%c0_78, %c0_79] : memref<8x128xf32, #tpu.memory_space<vmem>>, vector<8x128xf32>
      tpu.vector_store %arg5[%c0_78, %c0_79], %266 {strides = array<i32>} : memref<8x128xf32, #tpu.memory_space<vmem>>, vector<8x128xf32>,
    } else {
    }
    %c0 = arith.constant 0 : index
    %c0_1 = arith.constant 0 : index
    %3 = vector.load %arg4[%c0, %c0_1] : memref<8x128xf32, #tpu.memory_space<vmem>>, vector<8x128xf32>
    %c0_2 = arith.constant 0 : index
    %c0_3 = arith.constant 0 : index
    %4 = vector.load %arg5[%c0_2, %c0_3] : memref<8x128xf32, #tpu.memory_space<vmem>>, vector<8x128xf32>
    %c0_i32_4 = arith.constant 0 : i32
    %5 = arith.index_cast %c0_i32_4 : i32 to index
    %c0_5 = arith.constant 0 : index
    %c0_6 = arith.constant 0 : index
    %6 = vector.load %arg1[%5, %c0_5, %c0_6] : memref<8x8x512xf32, #tpu.memory_space<vmem>>, vector<1x8x512xf32>
    %7 = vector.shape_cast %6 : vector<1x8x512xf32> to vector<8x512xf32>
    %8 = arith.truncf %3 : vector<8x128xf32> to vector<8x128xbf16>
    %c0_7 = arith.constant 0 : index
    %c0_8 = arith.constant 0 : index
    %9 = vector.load %arg2[%c0_7, %c0_8] : memref<128x512xbf16, #tpu.memory_space<vmem>>, vector<128x512xbf16>
    %cst = arith.constant dense<0.000000e+00> : vector<8x512xf32>
    %10 = tpu.matmul %8, %9, %cst {dimension_numbers = #tpu.dot_dimension_numbers<[1], [0], [0], [1], [0, 0, 1, 1], [], []>} : vector<8x128xbf16>, vector<128x512xbf16>, vector<8x512xf32> -> vector<8x512xf32>
    %11 = arith.addf %7, %10 : vector<8x512xf32>
    %12 = vector.extract_strided_slice %11 {offsets = [0, 0], sizes = [8, 128], strides = [1, 1]} : vector<8x512xf32> to vector<8x128xf32>
    %13 = arith.negf %12 : vector<8x128xf32>
    %14 = math.exp %13 : vector<8x128xf32>
    %cst_9 = arith.constant 1.000000e+00 : f32
    %15 = vector.broadcast %cst_9 : f32 to vector<8x128xf32>
    %16 = arith.addf %15, %14 : vector<8x128xf32>
    %17 = arith.divf %15, %16 : vector<8x128xf32>
    %18 = vector.extract_strided_slice %11 {offsets = [0, 128], sizes = [8, 128], strides = [1, 1]} : vector<8x512xf32> to vector<8x128xf32>
    %19 = arith.negf %18 : vector<8x128xf32>
    %20 = math.exp %19 : vector<8x128xf32>
    %cst_10 = arith.constant 1.000000e+00 : f32
    %21 = vector.broadcast %cst_10 : f32 to vector<8x128xf32>
    %22 = arith.addf %21, %20 : vector<8x128xf32>
    %23 = arith.divf %21, %22 : vector<8x128xf32>
    %24 = vector.extract_strided_slice %11 {offsets = [0, 256], sizes = [8, 128], strides = [1, 1]} : vector<8x512xf32> to vector<8x128xf32>
    %25 = math.tanh %24 : vector<8x128xf32>
    %26 = vector.extract_strided_slice %11 {offsets = [0, 384], sizes = [8, 128], strides = [1, 1]} : vector<8x512xf32> to vector<8x128xf32>
    %27 = arith.negf %26 : vector<8x128xf32>
    %28 = math.exp %27 : vector<8x128xf32>
    %cst_11 = arith.constant 1.000000e+00 : f32
    %29 = vector.broadcast %cst_11 : f32 to vector<8x128xf32>
    %30 = arith.addf %29, %28 : vector<8x128xf32>
    %31 = arith.divf %29, %30 : vector<8x128xf32>
    %32 = arith.mulf %23, %4 : vector<8x128xf32>
    %33 = arith.mulf %17, %25 : vector<8x128xf32>
    %34 = arith.addf %32, %33 : vector<8x128xf32>
    %35 = math.tanh %34 : vector<8x128xf32>
    %36 = arith.mulf %31, %35 : vector<8x128xf32>
    %c1_i32 = arith.constant 1 : i32
    %37 = arith.index_cast %c1_i32 : i32 to index
    %c0_12 = arith.constant 0 : index
    %c0_13 = arith.constant 0 : index
    %38 = vector.load %arg1[%37, %c0_12, %c0_13] : memref<8x8x512xf32, #tpu.memory_space<vmem>>, vector<1x8x512xf32>
    %39 = vector.shape_cast %38 : vector<1x8x512xf32> to vector<8x512xf32>
    %40 = arith.truncf %36 : vector<8x128xf32> to vector<8x128xbf16>
    %c0_14 = arith.constant 0 : index
    %c0_15 = arith.constant 0 : index
    %41 = vector.load %arg2[%c0_14, %c0_15] : memref<128x512xbf16, #tpu.memory_space<vmem>>, vector<128x512xbf16>
    %cst_16 = arith.constant dense<0.000000e+00> : vector<8x512xf32>
    %42 = tpu.matmul %40, %41, %cst_16 {dimension_numbers = #tpu.dot_dimension_numbers<[1], [0], [0], [1], [0, 0, 1, 1], [], []>} : vector<8x128xbf16>, vector<128x512xbf16>, vector<8x512xf32> -> vector<8x512xf32>
    %43 = arith.addf %39, %42 : vector<8x512xf32>
    %44 = vector.extract_strided_slice %43 {offsets = [0, 0], sizes = [8, 128], strides = [1, 1]} : vector<8x512xf32> to vector<8x128xf32>
    %45 = arith.negf %44 : vector<8x128xf32>
    %46 = math.exp %45 : vector<8x128xf32>
    %cst_17 = arith.constant 1.000000e+00 : f32
    %47 = vector.broadcast %cst_17 : f32 to vector<8x128xf32>
    %48 = arith.addf %47, %46 : vector<8x128xf32>
    %49 = arith.divf %47, %48 : vector<8x128xf32>
    %50 = vector.extract_strided_slice %43 {offsets = [0, 128], sizes = [8, 128], strides = [1, 1]} : vector<8x512xf32> to vector<8x128xf32>
    %51 = arith.negf %50 : vector<8x128xf32>
    %52 = math.exp %51 : vector<8x128xf32>
    %cst_18 = arith.constant 1.000000e+00 : f32
    %53 = vector.broadcast %cst_18 : f32 to vector<8x128xf32>
    %54 = arith.addf %53, %52 : vector<8x128xf32>
    %55 = arith.divf %53, %54 : vector<8x128xf32>
    %56 = vector.extract_strided_slice %43 {offsets = [0, 256], sizes = [8, 128], strides = [1, 1]} : vector<8x512xf32> to vector<8x128xf32>
    %57 = math.tanh %56 : vector<8x128xf32>
    %58 = vector.extract_strided_slice %43 {offsets = [0, 384], sizes = [8, 128], strides = [1, 1]} : vector<8x512xf32> to vector<8x128xf32>
    %59 = arith.negf %58 : vector<8x128xf32>
    %60 = math.exp %59 : vector<8x128xf32>
    %cst_19 = arith.constant 1.000000e+00 : f32
    %61 = vector.broadcast %cst_19 : f32 to vector<8x128xf32>
    %62 = arith.addf %61, %60 : vector<8x128xf32>
    %63 = arith.divf %61, %62 : vector<8x128xf32>
    %64 = arith.mulf %55, %34 : vector<8x128xf32>
    %65 = arith.mulf %49, %57 : vector<8x128xf32>
    %66 = arith.addf %64, %65 : vector<8x128xf32>
    %67 = math.tanh %66 : vector<8x128xf32>
    %68 = arith.mulf %63, %67 : vector<8x128xf32>
    %c2_i32 = arith.constant 2 : i32
    %69 = arith.index_cast %c2_i32 : i32 to index
    %c0_20 = arith.constant 0 : index
    %c0_21 = arith.constant 0 : index
    %70 = vector.load %arg1[%69, %c0_20, %c0_21] : memref<8x8x512xf32, #tpu.memory_space<vmem>>, vector<1x8x512xf32>
    %71 = vector.shape_cast %70 : vector<1x8x512xf32> to vector<8x512xf32>
    %72 = arith.truncf %68 : vector<8x128xf32> to vector<8x128xbf16>
    %c0_22 = arith.constant 0 : index
    %c0_23 = arith.constant 0 : index
    %73 = vector.load %arg2[%c0_22, %c0_23] : memref<128x512xbf16, #tpu.memory_space<vmem>>, vector<128x512xbf16>
    %cst_24 = arith.constant dense<0.000000e+00> : vector<8x512xf32>
    %74 = tpu.matmul %72, %73, %cst_24 {dimension_numbers = #tpu.dot_dimension_numbers<[1], [0], [0], [1], [0, 0, 1, 1], [], []>} : vector<8x128xbf16>, vector<128x512xbf16>, vector<8x512xf32> -> vector<8x512xf32>
    %75 = arith.addf %71, %74 : vector<8x512xf32>
    %76 = vector.extract_strided_slice %75 {offsets = [0, 0], sizes = [8, 128], strides = [1, 1]} : vector<8x512xf32> to vector<8x128xf32>
    %77 = arith.negf %76 : vector<8x128xf32>
    %78 = math.exp %77 : vector<8x128xf32>
    %cst_25 = arith.constant 1.000000e+00 : f32
    %79 = vector.broadcast %cst_25 : f32 to vector<8x128xf32>
    %80 = arith.addf %79, %78 : vector<8x128xf32>
    %81 = arith.divf %79, %80 : vector<8x128xf32>
    %82 = vector.extract_strided_slice %75 {offsets = [0, 128], sizes = [8, 128], strides = [1, 1]} : vector<8x512xf32> to vector<8x128xf32>
    %83 = arith.negf %82 : vector<8x128xf32>
    %84 = math.exp %83 : vector<8x128xf32>
    %cst_26 = arith.constant 1.000000e+00 : f32
    %85 = vector.broadcast %cst_26 : f32 to vector<8x128xf32>
    %86 = arith.addf %85, %84 : vector<8x128xf32>
    %87 = arith.divf %85, %86 : vector<8x128xf32>
    %88 = vector.extract_strided_slice %75 {offsets = [0, 256], sizes = [8, 128], strides = [1, 1]} : vector<8x512xf32> to vector<8x128xf32>
    %89 = math.tanh %88 : vector<8x128xf32>
    %90 = vector.extract_strided_slice %75 {offsets = [0, 384], sizes = [8, 128], strides = [1, 1]} : vector<8x512xf32> to vector<8x128xf32>
    %91 = arith.negf %90 : vector<8x128xf32>
    %92 = math.exp %91 : vector<8x128xf32>
    %cst_27 = arith.constant 1.000000e+00 : f32
    %93 = vector.broadcast %cst_27 : f32 to vector<8x128xf32>
    %94 = arith.addf %93, %92 : vector<8x128xf32>
    %95 = arith.divf %93, %94 : vector<8x128xf32>
    %96 = arith.mulf %87, %66 : vector<8x128xf32>
    %97 = arith.mulf %81, %89 : vector<8x128xf32>
    %98 = arith.addf %96, %97 : vector<8x128xf32>
    %99 = math.tanh %98 : vector<8x128xf32>
    %100 = arith.mulf %95, %99 : vector<8x128xf32>
    %c3_i32 = arith.constant 3 : i32
    %101 = arith.index_cast %c3_i32 : i32 to index
    %c0_28 = arith.constant 0 : index
    %c0_29 = arith.constant 0 : index
    %102 = vector.load %arg1[%101, %c0_28, %c0_29] : memref<8x8x512xf32, #tpu.memory_space<vmem>>, vector<1x8x512xf32>
    %103 = vector.shape_cast %102 : vector<1x8x512xf32> to vector<8x512xf32>
    %104 = arith.truncf %100 : vector<8x128xf32> to vector<8x128xbf16>
    %c0_30 = arith.constant 0 : index
    %c0_31 = arith.constant 0 : index
    %105 = vector.load %arg2[%c0_30, %c0_31] : memref<128x512xbf16, #tpu.memory_space<vmem>>, vector<128x512xbf16>
    %cst_32 = arith.constant dense<0.000000e+00> : vector<8x512xf32>
    %106 = tpu.matmul %104, %105, %cst_32 {dimension_numbers = #tpu.dot_dimension_numbers<[1], [0], [0], [1], [0, 0, 1, 1], [], []>} : vector<8x128xbf16>, vector<128x512xbf16>, vector<8x512xf32> -> vector<8x512xf32>
    %107 = arith.addf %103, %106 : vector<8x512xf32>
    %108 = vector.extract_strided_slice %107 {offsets = [0, 0], sizes = [8, 128], strides = [1, 1]} : vector<8x512xf32> to vector<8x128xf32>
    %109 = arith.negf %108 : vector<8x128xf32>
    %110 = math.exp %109 : vector<8x128xf32>
    %cst_33 = arith.constant 1.000000e+00 : f32
    %111 = vector.broadcast %cst_33 : f32 to vector<8x128xf32>
    %112 = arith.addf %111, %110 : vector<8x128xf32>
    %113 = arith.divf %111, %112 : vector<8x128xf32>
    %114 = vector.extract_strided_slice %107 {offsets = [0, 128], sizes = [8, 128], strides = [1, 1]} : vector<8x512xf32> to vector<8x128xf32>
    %115 = arith.negf %114 : vector<8x128xf32>
    %116 = math.exp %115 : vector<8x128xf32>
    %cst_34 = arith.constant 1.000000e+00 : f32
    %117 = vector.broadcast %cst_34 : f32 to vector<8x128xf32>
    %118 = arith.addf %117, %116 : vector<8x128xf32>
    %119 = arith.divf %117, %118 : vector<8x128xf32>
    %120 = vector.extract_strided_slice %107 {offsets = [0, 256], sizes = [8, 128], strides = [1, 1]} : vector<8x512xf32> to vector<8x128xf32>
    %121 = math.tanh %120 : vector<8x128xf32>
    %122 = vector.extract_strided_slice %107 {offsets = [0, 384], sizes = [8, 128], strides = [1, 1]} : vector<8x512xf32> to vector<8x128xf32>
    %123 = arith.negf %122 : vector<8x128xf32>
    %124 = math.exp %123 : vector<8x128xf32>
    %cst_35 = arith.constant 1.000000e+00 : f32
    %125 = vector.broadcast %cst_35 : f32 to vector<8x128xf32>
    %126 = arith.addf %125, %124 : vector<8x128xf32>
    %127 = arith.divf %125, %126 : vector<8x128xf32>
    %128 = arith.mulf %119, %98 : vector<8x128xf32>
    %129 = arith.mulf %113, %121 : vector<8x128xf32>
    %130 = arith.addf %128, %129 : vector<8x128xf32>
    %131 = math.tanh %130 : vector<8x128xf32>
    %132 = arith.mulf %127, %131 : vector<8x128xf32>
    %c4_i32 = arith.constant 4 : i32
    %133 = arith.index_cast %c4_i32 : i32 to index
    %c0_36 = arith.constant 0 : index
    %c0_37 = arith.constant 0 : index
    %134 = vector.load %arg1[%133, %c0_36, %c0_37] : memref<8x8x512xf32, #tpu.memory_space<vmem>>, vector<1x8x512xf32>
    %135 = vector.shape_cast %134 : vector<1x8x512xf32> to vector<8x512xf32>
    %136 = arith.truncf %132 : vector<8x128xf32> to vector<8x128xbf16>
    %c0_38 = arith.constant 0 : index
    %c0_39 = arith.constant 0 : index
    %137 = vector.load %arg2[%c0_38, %c0_39] : memref<128x512xbf16, #tpu.memory_space<vmem>>, vector<128x512xbf16>
    %cst_40 = arith.constant dense<0.000000e+00> : vector<8x512xf32>
    %138 = tpu.matmul %136, %137, %cst_40 {dimension_numbers = #tpu.dot_dimension_numbers<[1], [0], [0], [1], [0, 0, 1, 1], [], []>} : vector<8x128xbf16>, vector<128x512xbf16>, vector<8x512xf32> -> vector<8x512xf32>
    %139 = arith.addf %135, %138 : vector<8x512xf32>
    %140 = vector.extract_strided_slice %139 {offsets = [0, 0], sizes = [8, 128], strides = [1, 1]} : vector<8x512xf32> to vector<8x128xf32>
    %141 = arith.negf %140 : vector<8x128xf32>
    %142 = math.exp %141 : vector<8x128xf32>
    %cst_41 = arith.constant 1.000000e+00 : f32
    %143 = vector.broadcast %cst_41 : f32 to vector<8x128xf32>
    %144 = arith.addf %143, %142 : vector<8x128xf32>
    %145 = arith.divf %143, %144 : vector<8x128xf32>
    %146 = vector.extract_strided_slice %139 {offsets = [0, 128], sizes = [8, 128], strides = [1, 1]} : vector<8x512xf32> to vector<8x128xf32>
    %147 = arith.negf %146 : vector<8x128xf32>
    %148 = math.exp %147 : vector<8x128xf32>
    %cst_42 = arith.constant 1.000000e+00 : f32
    %149 = vector.broadcast %cst_42 : f32 to vector<8x128xf32>
    %150 = arith.addf %149, %148 : vector<8x128xf32>
    %151 = arith.divf %149, %150 : vector<8x128xf32>
    %152 = vector.extract_strided_slice %139 {offsets = [0, 256], sizes = [8, 128], strides = [1, 1]} : vector<8x512xf32> to vector<8x128xf32>
    %153 = math.tanh %152 : vector<8x128xf32>
    %154 = vector.extract_strided_slice %139 {offsets = [0, 384], sizes = [8, 128], strides = [1, 1]} : vector<8x512xf32> to vector<8x128xf32>
    %155 = arith.negf %154 : vector<8x128xf32>
    %156 = math.exp %155 : vector<8x128xf32>
    %cst_43 = arith.constant 1.000000e+00 : f32
    %157 = vector.broadcast %cst_43 : f32 to vector<8x128xf32>
    %158 = arith.addf %157, %156 : vector<8x128xf32>
    %159 = arith.divf %157, %158 : vector<8x128xf32>
    %160 = arith.mulf %151, %130 : vector<8x128xf32>
    %161 = arith.mulf %145, %153 : vector<8x128xf32>
    %162 = arith.addf %160, %161 : vector<8x128xf32>
    %163 = math.tanh %162 : vector<8x128xf32>
    %164 = arith.mulf %159, %163 : vector<8x128xf32>
    %c5_i32 = arith.constant 5 : i32
    %165 = arith.index_cast %c5_i32 : i32 to index
    %c0_44 = arith.constant 0 : index
    %c0_45 = arith.constant 0 : index
    %166 = vector.load %arg1[%165, %c0_44, %c0_45] : memref<8x8x512xf32, #tpu.memory_space<vmem>>, vector<1x8x512xf32>
    %167 = vector.shape_cast %166 : vector<1x8x512xf32> to vector<8x512xf32>
    %168 = arith.truncf %164 : vector<8x128xf32> to vector<8x128xbf16>
    %c0_46 = arith.constant 0 : index
    %c0_47 = arith.constant 0 : index
    %169 = vector.load %arg2[%c0_46, %c0_47] : memref<128x512xbf16, #tpu.memory_space<vmem>>, vector<128x512xbf16>
    %cst_48 = arith.constant dense<0.000000e+00> : vector<8x512xf32>
    %170 = tpu.matmul %168, %169, %cst_48 {dimension_numbers = #tpu.dot_dimension_numbers<[1], [0], [0], [1], [0, 0, 1, 1], [], []>} : vector<8x128xbf16>, vector<128x512xbf16>, vector<8x512xf32> -> vector<8x512xf32>
    %171 = arith.addf %167, %170 : vector<8x512xf32>
    %172 = vector.extract_strided_slice %171 {offsets = [0, 0], sizes = [8, 128], strides = [1, 1]} : vector<8x512xf32> to vector<8x128xf32>
    %173 = arith.negf %172 : vector<8x128xf32>
    %174 = math.exp %173 : vector<8x128xf32>
    %cst_49 = arith.constant 1.000000e+00 : f32
    %175 = vector.broadcast %cst_49 : f32 to vector<8x128xf32>
    %176 = arith.addf %175, %174 : vector<8x128xf32>
    %177 = arith.divf %175, %176 : vector<8x128xf32>
    %178 = vector.extract_strided_slice %171 {offsets = [0, 128], sizes = [8, 128], strides = [1, 1]} : vector<8x512xf32> to vector<8x128xf32>
    %179 = arith.negf %178 : vector<8x128xf32>
    %180 = math.exp %179 : vector<8x128xf32>
    %cst_50 = arith.constant 1.000000e+00 : f32
    %181 = vector.broadcast %cst_50 : f32 to vector<8x128xf32>
    %182 = arith.addf %181, %180 : vector<8x128xf32>
    %183 = arith.divf %181, %182 : vector<8x128xf32>
    %184 = vector.extract_strided_slice %171 {offsets = [0, 256], sizes = [8, 128], strides = [1, 1]} : vector<8x512xf32> to vector<8x128xf32>
    %185 = math.tanh %184 : vector<8x128xf32>
    %186 = vector.extract_strided_slice %171 {offsets = [0, 384], sizes = [8, 128], strides = [1, 1]} : vector<8x512xf32> to vector<8x128xf32>
    %187 = arith.negf %186 : vector<8x128xf32>
    %188 = math.exp %187 : vector<8x128xf32>
    %cst_51 = arith.constant 1.000000e+00 : f32
    %189 = vector.broadcast %cst_51 : f32 to vector<8x128xf32>
    %190 = arith.addf %189, %188 : vector<8x128xf32>
    %191 = arith.divf %189, %190 : vector<8x128xf32>
    %192 = arith.mulf %183, %162 : vector<8x128xf32>
    %193 = arith.mulf %177, %185 : vector<8x128xf32>
    %194 = arith.addf %192, %193 : vector<8x128xf32>
    %195 = math.tanh %194 : vector<8x128xf32>
    %196 = arith.mulf %191, %195 : vector<8x128xf32>
    %c6_i32 = arith.constant 6 : i32
    %197 = arith.index_cast %c6_i32 : i32 to index
    %c0_52 = arith.constant 0 : index
    %c0_53 = arith.constant 0 : index
    %198 = vector.load %arg1[%197, %c0_52, %c0_53] : memref<8x8x512xf32, #tpu.memory_space<vmem>>, vector<1x8x512xf32>
    %199 = vector.shape_cast %198 : vector<1x8x512xf32> to vector<8x512xf32>
    %200 = arith.truncf %196 : vector<8x128xf32> to vector<8x128xbf16>
    %c0_54 = arith.constant 0 : index
    %c0_55 = arith.constant 0 : index
    %201 = vector.load %arg2[%c0_54, %c0_55] : memref<128x512xbf16, #tpu.memory_space<vmem>>, vector<128x512xbf16>
    %cst_56 = arith.constant dense<0.000000e+00> : vector<8x512xf32>
    %202 = tpu.matmul %200, %201, %cst_56 {dimension_numbers = #tpu.dot_dimension_numbers<[1], [0], [0], [1], [0, 0, 1, 1], [], []>} : vector<8x128xbf16>, vector<128x512xbf16>, vector<8x512xf32> -> vector<8x512xf32>
    %203 = arith.addf %199, %202 : vector<8x512xf32>
    %204 = vector.extract_strided_slice %203 {offsets = [0, 0], sizes = [8, 128], strides = [1, 1]} : vector<8x512xf32> to vector<8x128xf32>
    %205 = arith.negf %204 : vector<8x128xf32>
    %206 = math.exp %205 : vector<8x128xf32>
    %cst_57 = arith.constant 1.000000e+00 : f32
    %207 = vector.broadcast %cst_57 : f32 to vector<8x128xf32>
    %208 = arith.addf %207, %206 : vector<8x128xf32>
    %209 = arith.divf %207, %208 : vector<8x128xf32>
    %210 = vector.extract_strided_slice %203 {offsets = [0, 128], sizes = [8, 128], strides = [1, 1]} : vector<8x512xf32> to vector<8x128xf32>
    %211 = arith.negf %210 : vector<8x128xf32>
    %212 = math.exp %211 : vector<8x128xf32>
    %cst_58 = arith.constant 1.000000e+00 : f32
    %213 = vector.broadcast %cst_58 : f32 to vector<8x128xf32>
    %214 = arith.addf %213, %212 : vector<8x128xf32>
    %215 = arith.divf %213, %214 : vector<8x128xf32>
    %216 = vector.extract_strided_slice %203 {offsets = [0, 256], sizes = [8, 128], strides = [1, 1]} : vector<8x512xf32> to vector<8x128xf32>
    %217 = math.tanh %216 : vector<8x128xf32>
    %218 = vector.extract_strided_slice %203 {offsets = [0, 384], sizes = [8, 128], strides = [1, 1]} : vector<8x512xf32> to vector<8x128xf32>
    %219 = arith.negf %218 : vector<8x128xf32>
    %220 = math.exp %219 : vector<8x128xf32>
    %cst_59 = arith.constant 1.000000e+00 : f32
    %221 = vector.broadcast %cst_59 : f32 to vector<8x128xf32>
    %222 = arith.addf %221, %220 : vector<8x128xf32>
    %223 = arith.divf %221, %222 : vector<8x128xf32>
    %224 = arith.mulf %215, %194 : vector<8x128xf32>
    %225 = arith.mulf %209, %217 : vector<8x128xf32>
    %226 = arith.addf %224, %225 : vector<8x128xf32>
    %227 = math.tanh %226 : vector<8x128xf32>
    %228 = arith.mulf %223, %227 : vector<8x128xf32>
    %c7_i32 = arith.constant 7 : i32
    %229 = arith.index_cast %c7_i32 : i32 to index
    %c0_60 = arith.constant 0 : index
    %c0_61 = arith.constant 0 : index
    %230 = vector.load %arg1[%229, %c0_60, %c0_61] : memref<8x8x512xf32, #tpu.memory_space<vmem>>, vector<1x8x512xf32>
    %231 = vector.shape_cast %230 : vector<1x8x512xf32> to vector<8x512xf32>
    %232 = arith.truncf %228 : vector<8x128xf32> to vector<8x128xbf16>
    %c0_62 = arith.constant 0 : index
    %c0_63 = arith.constant 0 : index
    %233 = vector.load %arg2[%c0_62, %c0_63] : memref<128x512xbf16, #tpu.memory_space<vmem>>, vector<128x512xbf16>
    %cst_64 = arith.constant dense<0.000000e+00> : vector<8x512xf32>
    %234 = tpu.matmul %232, %233, %cst_64 {dimension_numbers = #tpu.dot_dimension_numbers<[1], [0], [0], [1], [0, 0, 1, 1], [], []>} : vector<8x128xbf16>, vector<128x512xbf16>, vector<8x512xf32> -> vector<8x512xf32>
    %235 = arith.addf %231, %234 : vector<8x512xf32>
    %236 = vector.extract_strided_slice %235 {offsets = [0, 0], sizes = [8, 128], strides = [1, 1]} : vector<8x512xf32> to vector<8x128xf32>
    %237 = arith.negf %236 : vector<8x128xf32>
    %238 = math.exp %237 : vector<8x128xf32>
    %cst_65 = arith.constant 1.000000e+00 : f32
    %239 = vector.broadcast %cst_65 : f32 to vector<8x128xf32>
    %240 = arith.addf %239, %238 : vector<8x128xf32>
    %241 = arith.divf %239, %240 : vector<8x128xf32>
    %242 = vector.extract_strided_slice %235 {offsets = [0, 128], sizes = [8, 128], strides = [1, 1]} : vector<8x512xf32> to vector<8x128xf32>
    %243 = arith.negf %242 : vector<8x128xf32>
    %244 = math.exp %243 : vector<8x128xf32>
    %cst_66 = arith.constant 1.000000e+00 : f32
    %245 = vector.broadcast %cst_66 : f32 to vector<8x128xf32>
    %246 = arith.addf %245, %244 : vector<8x128xf32>
    %247 = arith.divf %245, %246 : vector<8x128xf32>
    %248 = vector.extract_strided_slice %235 {offsets = [0, 256], sizes = [8, 128], strides = [1, 1]} : vector<8x512xf32> to vector<8x128xf32>
    %249 = math.tanh %248 : vector<8x128xf32>
    %250 = vector.extract_strided_slice %235 {offsets = [0, 384], sizes = [8, 128], strides = [1, 1]} : vector<8x512xf32> to vector<8x128xf32>
    %251 = arith.negf %250 : vector<8x128xf32>
    %252 = math.exp %251 : vector<8x128xf32>
    %cst_67 = arith.constant 1.000000e+00 : f32
    %253 = vector.broadcast %cst_67 : f32 to vector<8x128xf32>
    %254 = arith.addf %253, %252 : vector<8x128xf32>
    %255 = arith.divf %253, %254 : vector<8x128xf32>
    %256 = arith.mulf %247, %226 : vector<8x128xf32>
    %257 = arith.mulf %241, %249 : vector<8x128xf32>
    %258 = arith.addf %256, %257 : vector<8x128xf32>
    %259 = math.tanh %258 : vector<8x128xf32>
    %260 = arith.mulf %255, %259 : vector<8x128xf32>
    %c8_i32 = arith.constant 8 : i32
    %c0_68 = arith.constant 0 : index
    %c0_69 = arith.constant 0 : index
    %261 = vector.load %arg4[%c0_68, %c0_69] : memref<8x128xf32, #tpu.memory_space<vmem>>, vector<8x128xf32>
    tpu.vector_store %arg4[%c0_68, %c0_69], %260 {strides = array<i32>} : memref<8x128xf32, #tpu.memory_space<vmem>>, vector<8x128xf32>,
    %c0_70 = arith.constant 0 : index
    %c0_71 = arith.constant 0 : index
    %262 = vector.load %arg5[%c0_70, %c0_71] : memref<8x128xf32, #tpu.memory_space<vmem>>, vector<8x128xf32>
    tpu.vector_store %arg5[%c0_70, %c0_71], %258 {strides = array<i32>} : memref<8x128xf32, #tpu.memory_space<vmem>>, vector<8x128xf32>,
    %c0_72 = arith.constant 0 : index
    %c0_73 = arith.constant 0 : index
    %263 = vector.load %arg3[%c0_72, %c0_73] : memref<8x128xf32, #tpu.memory_space<vmem>>, vector<8x128xf32>
    tpu.vector_store %arg3[%c0_72, %c0_73], %260 {strides = array<i32>} : memref<8x128xf32, #tpu.memory_space<vmem>>, vector<8x128xf32>,
    return
  }
  func.func @transform_0(%arg0: i32) -> (i32, i32, i32) {
    %c0_i32 = arith.constant 0 : i32
    %c0_i32_0 = arith.constant 0 : i32
    %c0_i32_1 = arith.constant 0 : i32
    return %arg0, %c0_i32, %c0_i32_0 : i32, i32, i32
  }
  func.func @transform_1(%arg0: i32) -> (i32, i32) {
    %c0_i32 = arith.constant 0 : i32
    %c0_i32_0 = arith.constant 0 : i32
    %c0_i32_1 = arith.constant 0 : i32
    return %c0_i32, %c0_i32_0 : i32, i32
  }
  func.func @transform_2(%arg0: i32) -> (i32, i32) {
    %c0_i32 = arith.constant 0 : i32
    %c0_i32_0 = arith.constant 0 : i32
    %c0_i32_1 = arith.constant 0 : i32
    return %c0_i32, %c0_i32_0 : i32, i32
  }
}

module attributes {stable_mosaic.version = 11 : i64} {
  func.func @_in_proj_kernel(%arg0: i32, %arg1: memref<64x16xbf16, #tpu.memory_space<vmem>>, %arg2: memref<16x512xbf16, #tpu.memory_space<vmem>>, %arg3: memref<1x512xf32, #tpu.memory_space<vmem>>, %arg4: memref<64x512xf32, #tpu.memory_space<vmem>>) attributes {dimension_semantics = [#tpu.dimension_semantics<parallel>], iteration_bounds = array<i64: 1>, scalar_prefetch = 0 : i64, scratch_operands = 0 : i64, tpu.core_type = #tpu.core_type<tc>, window_params = [{transform_indices = @transform_0, window_bounds = array<i64: 64, 16>}, {pipeline_mode = #tpu.pipeline_mode<synchronous>, transform_indices = @transform_1, window_bounds = array<i64: 16, 512>}, {pipeline_mode = #tpu.pipeline_mode<synchronous>, transform_indices = @transform_2, window_bounds = array<i64: 1, 512>}, {transform_indices = @transform_3, window_bounds = array<i64: 64, 512>}]} {
    %c0 = arith.constant 0 : index
    %c0_0 = arith.constant 0 : index
    %0 = vector.load %arg1[%c0, %c0_0] : memref<64x16xbf16, #tpu.memory_space<vmem>>, vector<64x16xbf16>
    %c0_1 = arith.constant 0 : index
    %c0_2 = arith.constant 0 : index
    %1 = vector.load %arg2[%c0_1, %c0_2] : memref<16x512xbf16, #tpu.memory_space<vmem>>, vector<16x512xbf16>
    %cst = arith.constant dense<0.000000e+00> : vector<64x512xf32>
    %2 = tpu.matmul %0, %1, %cst {dimension_numbers = #tpu.dot_dimension_numbers<[1], [0], [0], [1], [0, 0, 1, 1], [], []>} : vector<64x16xbf16>, vector<16x512xbf16>, vector<64x512xf32> -> vector<64x512xf32>
    %c0_3 = arith.constant 0 : index
    %c0_4 = arith.constant 0 : index
    %3 = vector.load %arg3[%c0_3, %c0_4] : memref<1x512xf32, #tpu.memory_space<vmem>>, vector<1x512xf32>
    %4 = vector.broadcast %3 : vector<1x512xf32> to vector<64x512xf32>
    %5 = arith.addf %2, %4 : vector<64x512xf32>
    %c0_5 = arith.constant 0 : index
    %c0_6 = arith.constant 0 : index
    %6 = vector.load %arg4[%c0_5, %c0_6] : memref<64x512xf32, #tpu.memory_space<vmem>>, vector<64x512xf32>
    tpu.vector_store %arg4[%c0_5, %c0_6], %5 {strides = array<i32>} : memref<64x512xf32, #tpu.memory_space<vmem>>, vector<64x512xf32>,
    return
  }
  func.func @transform_0(%arg0: i32) -> (i32, i32) {
    %c0_i32 = arith.constant 0 : i32
    %c0_i32_0 = arith.constant 0 : i32
    return %arg0, %c0_i32 : i32, i32
  }
  func.func @transform_1(%arg0: i32) -> (i32, i32) {
    %c0_i32 = arith.constant 0 : i32
    %c0_i32_0 = arith.constant 0 : i32
    %c0_i32_1 = arith.constant 0 : i32
    return %c0_i32, %c0_i32_0 : i32, i32
  }
  func.func @transform_2(%arg0: i32) -> (i32, i32) {
    %c0_i32 = arith.constant 0 : i32
    %c0_i32_0 = arith.constant 0 : i32
    %c0_i32_1 = arith.constant 0 : i32
    return %c0_i32, %c0_i32_0 : i32, i32
  }
  func.func @transform_3(%arg0: i32) -> (i32, i32) {
    %c0_i32 = arith.constant 0 : i32
    %c0_i32_0 = arith.constant 0 : i32
    return %arg0, %c0_i32 : i32, i32
  }
}

module attributes {stable_mosaic.version = 11 : i64} {
  func.func @_fc_kernel(%arg0: i32, %arg1: memref<8x128xf32, #tpu.memory_space<vmem>>, %arg2: memref<128x128xbf16, #tpu.memory_space<vmem>>, %arg3: memref<1x128xf32, #tpu.memory_space<vmem>>, %arg4: memref<8x128xf32, #tpu.memory_space<vmem>>) attributes {dimension_semantics = [#tpu.dimension_semantics<arbitrary>], iteration_bounds = array<i64: 1>, scalar_prefetch = 0 : i64, scratch_operands = 0 : i64, tpu.core_type = #tpu.core_type<tc>, window_params = [{pipeline_mode = #tpu.pipeline_mode<synchronous>, transform_indices = @transform_0, window_bounds = array<i64: 8, 128>}, {pipeline_mode = #tpu.pipeline_mode<synchronous>, transform_indices = @transform_1, window_bounds = array<i64: 128, 128>}, {pipeline_mode = #tpu.pipeline_mode<synchronous>, transform_indices = @transform_2, window_bounds = array<i64: 1, 128>}, {pipeline_mode = #tpu.pipeline_mode<synchronous>, transform_indices = @transform_3, window_bounds = array<i64: 8, 128>}]} {
    %c0 = arith.constant 0 : index
    %c0_0 = arith.constant 0 : index
    %0 = vector.load %arg1[%c0, %c0_0] : memref<8x128xf32, #tpu.memory_space<vmem>>, vector<8x128xf32>
    %1 = arith.truncf %0 : vector<8x128xf32> to vector<8x128xbf16>
    %c0_1 = arith.constant 0 : index
    %c0_2 = arith.constant 0 : index
    %2 = vector.load %arg2[%c0_1, %c0_2] : memref<128x128xbf16, #tpu.memory_space<vmem>>, vector<128x128xbf16>
    %cst = arith.constant dense<0.000000e+00> : vector<8x128xf32>
    %3 = tpu.matmul %1, %2, %cst {dimension_numbers = #tpu.dot_dimension_numbers<[1], [0], [0], [1], [0, 0, 1, 1], [], []>} : vector<8x128xbf16>, vector<128x128xbf16>, vector<8x128xf32> -> vector<8x128xf32>
    %c0_3 = arith.constant 0 : index
    %c0_4 = arith.constant 0 : index
    %4 = vector.load %arg3[%c0_3, %c0_4] : memref<1x128xf32, #tpu.memory_space<vmem>>, vector<1x128xf32>
    %5 = vector.broadcast %4 : vector<1x128xf32> to vector<8x128xf32>
    %6 = arith.addf %3, %5 : vector<8x128xf32>
    %c0_5 = arith.constant 0 : index
    %c0_6 = arith.constant 0 : index
    %7 = vector.load %arg4[%c0_5, %c0_6] : memref<8x128xf32, #tpu.memory_space<vmem>>, vector<8x128xf32>
    tpu.vector_store %arg4[%c0_5, %c0_6], %6 {strides = array<i32>} : memref<8x128xf32, #tpu.memory_space<vmem>>, vector<8x128xf32>,
    return
  }
  func.func @transform_0(%arg0: i32) -> (i32, i32) {
    %c0_i32 = arith.constant 0 : i32
    %c0_i32_0 = arith.constant 0 : i32
    %c0_i32_1 = arith.constant 0 : i32
    return %c0_i32, %c0_i32_0 : i32, i32
  }
  func.func @transform_1(%arg0: i32) -> (i32, i32) {
    %c0_i32 = arith.constant 0 : i32
    %c0_i32_0 = arith.constant 0 : i32
    %c0_i32_1 = arith.constant 0 : i32
    return %c0_i32, %c0_i32_0 : i32, i32
  }
  func.func @transform_2(%arg0: i32) -> (i32, i32) {
    %c0_i32 = arith.constant 0 : i32
    %c0_i32_0 = arith.constant 0 : i32
    %c0_i32_1 = arith.constant 0 : i32
    return %c0_i32, %c0_i32_0 : i32, i32
  }
  func.func @transform_3(%arg0: i32) -> (i32, i32) {
    %c0_i32 = arith.constant 0 : i32
    %c0_i32_0 = arith.constant 0 : i32
    %c0_i32_1 = arith.constant 0 : i32
    return %c0_i32, %c0_i32_0 : i32, i32
  }
}

</mosaic_0001>

<bundles_post_ra>
// kernel: lstm_forward.5
= control target key start
LH: loop header
LB: loop body
LE: loop exit
PB: predicated region body
PF: predicated region fallthrough
CT: control target
= control target key end

     0   :  { %s196_s1 = inlined_call_operand.vmem [shape: bf16[128,128], index: 1, kind: input, shape index: {}]   ;;  %s197_s2 = inlined_call_operand.vmem [shape: f32[1,128], index: 2, kind: input, shape index: {}]   ;;  %s198_s0 = inlined_call_operand.vmem [shape: f32[8,128], index: 0, kind: input, shape index: {}]   ;;  %s199_s3 = inlined_call_operand.vmem [shape: f32[8,128], index: 3, kind: output, shape index: {}]  }
   0x1   :  { %v141_v0 = vld [vmem:[%s196_s1 + $0x38] sm:$0xff]  ;;  %v140_v1 = vld [vmem:[%s196_s1 + $0x30] sm:$0xff]  ;;  %v139_v2 = vld [vmem:[%s196_s1 + $0x28] sm:$0xff] }
   0x2   :  { %84 = vmatpush.bf16.msra.mxu0 %v141_v0  ;;  %v138_v3 = vld [vmem:[%s196_s1 + $0x20] sm:$0xff]  ;;  %v137_v4 = vld [vmem:[%s196_s1 + $0x18] sm:$0xff]  ;;  %v136_v5 = vld [vmem:[%s196_s1 + $0x10] sm:$0xff] }
   0x3   :  { %v135_v6 = vld [vmem:[%s196_s1 + $0x8] sm:$0xff]  ;;  %v134_v7 = vld [vmem:[%s196_s1] sm:$0xff] }
   0x4   :  { %v14_v8 = vld [vmem:[%s198_s0] sm:$0xff] }
   0x5   :  { %v15_v9 = vpack.c.bf16 %v14_v8, %v14_v8  ;;  %v142_v10 = vld [vmem:[%s197_s2] ss:$0 sm:$0xff] }
   0x6   :  { %85 = vmatpush.bf16.msra.mxu0 %v140_v1 }
   0xa   :  { %86 = vmatpush.bf16.msra.mxu0 %v139_v2 }
   0xe   :  { %87 = vmatpush.bf16.msra.mxu0 %v138_v3 }
  0x12   :  { %88 = vmatpush.bf16.msra.mxu0 %v137_v4 }
  0x16   :  { %89 = vmatpush.bf16.msra.mxu0 %v136_v5 }
  0x1a   :  { %90 = vmatpush.bf16.msra.mxu0 %v135_v6 }
  0x1e   :  { %91 = vmatpush.bf16.msra.mxu0 %v134_v7 }
  0x21   :  { %92 = vmatmul.bf16.vlgmr.msra.gmra.mxu0 %v15_v9 }
  0x9e   :  { %v93_v11 = vpop.f32.mrf.mxu0 }
  0x9f   :  { %v94_v12 = vadd.f32 %v142_v10, %v93_v11 }
  0xa1   :  { %97 = vst [vmem:[%s199_s3] sm:$0xff] %v94_v12 }
  0xa6   :  { %v95_v13 = vpop.f32.mrf.mxu0 }

// kernel: lstm_forward.3
= control target key start
LH: loop header
LB: loop body
LE: loop exit
PB: predicated region body
PF: predicated region fallthrough
CT: control target
= control target key end

     0   :  { %vm77_vm0 = vcmask 130048   ;;  %s509_s1 = inlined_call_operand.vmem [shape: bf16[16,512], index: 1, kind: input, shape index: {}]   ;;  %s510_s0 = inlined_call_operand.vmem [shape: bf16[64,16], index: 0, kind: input, shape index: {}]   ;;  %s511_s2 = inlined_call_operand.vmem [shape: f32[1,512], index: 2, kind: input, shape index: {}]   ;;  %s512_s3 = inlined_call_operand.vmem [shape: f32[64,512], index: 3, kind: output, shape index: {}]  }
   0x1   :  { %v260_v0 = vld [vmem:[%s509_s1] sm:$0xf]  ;;  %v296_v1 = vld [vmem:[%s509_s1 + $0xc] sm:$0xf0]  ;;  %v294_v2 = vld [vmem:[%s509_s1 + $0x4] sm:$0xf] }
   0x2   :  { %v261_v3 = vor.u32 %v296_v1, %v260_v0  ;;  %v262_v4 = vld [vmem:[%s509_s1 + $0x10] sm:$0xf0]  ;;  %v268_v5 = vld [vmem:[%s509_s1 + $0x8] sm:$0xf]  ;;  %v297_v6 = vld [vmem:[%s509_s1 + $0x14] sm:$0xf0] }
   0x3   :  { %v265_v7 = vor.u32 %v294_v2, %v262_v4  ;;  %v269_v8 = vor.u32 %v297_v6, %v268_v5  ;;  %v295_v9 = vld [vmem:[%s509_s1 + $0xc] sm:$0xf]  ;;  %v270_v10 = vld [vmem:[%s509_s1 + $0x18] sm:$0xf0]  ;;  %v290_v11 = vld [vmem:[%s510_s0] sm:$0xff] }
   0x4   :  { %97 = vmatpush.bf16.msra.mxu0 %v261_v3  ;;  %v273_v12 = vor.u32 %v295_v9, %v270_v10  ;;  %v291_v13 = vld [vmem:[%s510_s0 + $0x8] sm:$0xff]  ;;  %v292_v14 = vld [vmem:[%s510_s0 + $0x10] sm:$0xff]  ;;  %v293_v15 = vld [vmem:[%s510_s0 + $0x18] sm:$0xff] }
   0x5   :  { %126 = vmatpush.bf16.msra.mxu1 %v265_v7  ;;  %155 = vmatpush.bf16.msra.mxu2 %v269_v8  ;;  %v27_v16 = vld [vmem:[%s511_s2] sm:$0xf] }
   0x6   :  { %184 = vmatpush.bf16.msra.mxu3 %v273_v12  ;;  %v373_v17 = vperm.slane %v27_v16, 0  ;;  %v375_v18 = vperm.slane %v27_v16, 1  ;;  %v385_v23 = vperm.slane %v27_v16, 2  ;;  %v387_v24 = vperm.slane %v27_v16, 3 }
   0x7   :  { %274 = vmatmul.msk.bf16.vlgmr.msra.gmra.mxu0 %vm77_vm0, %v290_v11 }
   0x8   :  { %278 = vmatmul.msk.bf16.vlgmr.msra.gmra.mxu1 %vm77_vm0, %v290_v11  ;;  %282 = vmatmul.msk.bf16.vlgmr.msra.gmra.mxu2 %vm77_vm0, %v290_v11 }
   0x9   :  { %286 = vmatmul.msk.bf16.vlgmr.msra.gmra.mxu3 %vm77_vm0, %v290_v11 }
  0x17   :  { %275 = vmatmul.msk.bf16.gmra.mxu0 %vm77_vm0, %v291_v13 }
  0x18   :  { %279 = vmatmul.msk.bf16.gmra.mxu1 %vm77_vm0, %v291_v13  ;;  %283 = vmatmul.msk.bf16.gmra.mxu2 %vm77_vm0, %v291_v13 }
  0x19   :  { %287 = vmatmul.msk.bf16.gmra.mxu3 %vm77_vm0, %v291_v13 }
  0x27   :  { %276 = vmatmul.msk.bf16.gmra.mxu0 %vm77_vm0, %v292_v14 }
  0x28   :  { %280 = vmatmul.msk.bf16.gmra.mxu1 %vm77_vm0, %v292_v14  ;;  %284 = vmatmul.msk.bf16.gmra.mxu2 %vm77_vm0, %v292_v14 }
  0x29   :  { %288 = vmatmul.msk.bf16.gmra.mxu3 %vm77_vm0, %v292_v14 }
  0x37   :  { %277 = vmatmul.msk.bf16.gmra.mxu0 %vm77_vm0, %v293_v15 }
  0x38   :  { %281 = vmatmul.msk.bf16.gmra.mxu1 %vm77_vm0, %v293_v15  ;;  %285 = vmatmul.msk.bf16.gmra.mxu2 %vm77_vm0, %v293_v15 }
  0x39   :  { %289 = vmatmul.msk.bf16.gmra.mxu3 %vm77_vm0, %v293_v15 }
  0x84   :  { %v99_v19 = vpop.f32.mrf.mxu0 }
  0x85   :  { %v100_v20 = vadd.f32 %v99_v19, %v373_v17  ;;  %v128_v21 = vpop.f32.mrf.mxu1 }
  0x86   :  { %v129_v22 = vadd.f32 %v128_v21, %v375_v18 }
  0x87   :  { %206 = vst [vmem:[%s512_s3] sm:$0xff] %v100_v20 }
  0x88   :  { %207 = vst [vmem:[%s512_s3 + $0x8] sm:$0xff] %v129_v22 }
  0x8b   :  { %v157_v25 = vpop.f32.mrf.mxu2 }
  0x8c   :  { %v158_v26 = vadd.f32 %v157_v25, %v385_v23  ;;  %v186_v27 = vpop.f32.mrf.mxu3  ;;  %v101_v28 = vpop.f32.mrf.mxu0 }
  0x8d   :  { %v187_v29 = vadd.f32 %v186_v27, %v387_v24  ;;  %v102_v30 = vadd.f32 %v101_v28, %v373_v17  ;;  %v130_v31 = vpop.f32.mrf.mxu1 }
  0x8e   :  { %208 = vst [vmem:[%s512_s3 + $0x10] sm:$0xff] %v158_v26  ;;  %v131_v32 = vadd.f32 %v130_v31, %v375_v18 }
  0x8f   :  { %209 = vst [vmem:[%s512_s3 + $0x18] sm:$0xff] %v187_v29 }
  0x90   :  { %210 = vst [vmem:[%s512_s3 + $0x20] sm:$0xff] %v102_v30 }
  0x91   :  { %211 = vst [vmem:[%s512_s3 + $0x28] sm:$0xff] %v131_v32 }
  0x93   :  { %v159_v33 = vpop.f32.mrf.mxu2 }
  0x94   :  { %v160_v34 = vadd.f32 %v159_v33, %v385_v23  ;;  %v188_v35 = vpop.f32.mrf.mxu3  ;;  %v104_v36 = vpop.f32.mrf.mxu0 }
  0x95   :  { %v189_v37 = vadd.f32 %v188_v35, %v387_v24  ;;  %v105_v38 = vadd.f32 %v104_v36, %v373_v17  ;;  %v133_v39 = vpop.f32.mrf.mxu1 }
  0x96   :  { %212 = vst [vmem:[%s512_s3 + $0x30] sm:$0xff] %v160_v34  ;;  %v134_v40 = vadd.f32 %v133_v39, %v375_v18 }
  0x97   :  { %213 = vst [vmem:[%s512_s3 + $0x38] sm:$0xff] %v189_v37 }
  0x98   :  { %214 = vst [vmem:[%s512_s3 + $0x40] sm:$0xff] %v105_v38 }
  0x99   :  { %215 = vst [vmem:[%s512_s3 + $0x48] sm:$0xff] %v134_v40 }
  0x9b   :  { %v162_v41 = vpop.f32.mrf.mxu2 }
  0x9c   :  { %v163_v42 = vadd.f32 %v162_v41, %v385_v23  ;;  %v191_v43 = vpop.f32.mrf.mxu3  ;;  %v106_v44 = vpop.f32.mrf.mxu0 }
  0x9d   :  { %v192_v45 = vadd.f32 %v191_v43, %v387_v24  ;;  %v107_v46 = vadd.f32 %v106_v44, %v373_v17  ;;  %v135_v47 = vpop.f32.mrf.mxu1 }
  0x9e   :  { %216 = vst [vmem:[%s512_s3 + $0x50] sm:$0xff] %v163_v42  ;;  %v136_v48 = vadd.f32 %v135_v47, %v375_v18 }
  0x9f   :  { %217 = vst [vmem:[%s512_s3 + $0x58] sm:$0xff] %v192_v45 }
  0xa0   :  { %218 = vst [vmem:[%s512_s3 + $0x60] sm:$0xff] %v107_v46 }
  0xa1   :  { %219 = vst [vmem:[%s512_s3 + $0x68] sm:$0xff] %v136_v48 }
  0xa3   :  { %v164_v49 = vpop.f32.mrf.mxu2 }
  0xa4   :  { %v165_v50 = vadd.f32 %v164_v49, %v385_v23  ;;  %v193_v51 = vpop.f32.mrf.mxu3  ;;  %v109_v52 = vpop.f32.mrf.mxu0 }
  0xa5   :  { %v194_v53 = vadd.f32 %v193_v51, %v387_v24  ;;  %v110_v54 = vadd.f32 %v109_v52, %v373_v17  ;;  %v138_v55 = vpop.f32.mrf.mxu1 }
  0xa6   :  { %220 = vst [vmem:[%s512_s3 + $0x70] sm:$0xff] %v165_v50  ;;  %v139_v56 = vadd.f32 %v138_v55, %v375_v18 }
  0xa7   :  { %221 = vst [vmem:[%s512_s3 + $0x78] sm:$0xff] %v194_v53 }
  0xa8   :  { %222 = vst [vmem:[%s512_s3 + $0x80] sm:$0xff] %v110_v54 }
  0xa9   :  { %223 = vst [vmem:[%s512_s3 + $0x88] sm:$0xff] %v139_v56 }
  0xab   :  { %v167_v57 = vpop.f32.mrf.mxu2 }
  0xac   :  { %v168_v58 = vadd.f32 %v167_v57, %v385_v23  ;;  %v196_v59 = vpop.f32.mrf.mxu3  ;;  %v111_v60 = vpop.f32.mrf.mxu0 }
  0xad   :  { %v197_v61 = vadd.f32 %v196_v59, %v387_v24  ;;  %v112_v62 = vadd.f32 %v111_v60, %v373_v17  ;;  %v140_v63 = vpop.f32.mrf.mxu1 }
  0xae   :  { %224 = vst [vmem:[%s512_s3 + $0x90] sm:$0xff] %v168_v58  ;;  %v141_v0 = vadd.f32 %v140_v63, %v375_v18 }
  0xaf   :  { %225 = vst [vmem:[%s512_s3 + $0x98] sm:$0xff] %v197_v61 }
  0xb0   :  { %226 = vst [vmem:[%s512_s3 + $0xa0] sm:$0xff] %v112_v62 }
  0xb1   :  { %227 = vst [vmem:[%s512_s3 + $0xa8] sm:$0xff] %v141_v0 }
  0xb3   :  { %v169_v1 = vpop.f32.mrf.mxu2 }
  0xb4   :  { %v170_v2 = vadd.f32 %v169_v1, %v385_v23  ;;  %v198_v3 = vpop.f32.mrf.mxu3  ;;  %v114_v4 = vpop.f32.mrf.mxu0 }
  0xb5   :  { %v199_v5 = vadd.f32 %v198_v3, %v387_v24  ;;  %v115_v6 = vadd.f32 %v114_v4, %v373_v17  ;;  %v143_v7 = vpop.f32.mrf.mxu1 }
  0xb6   :  { %228 = vst [vmem:[%s512_s3 + $0xb0] sm:$0xff] %v170_v2  ;;  %v144_v8 = vadd.f32 %v143_v7, %v375_v18 }
  0xb7   :  { %229 = vst [vmem:[%s512_s3 + $0xb8] sm:$0xff] %v199_v5 }
  0xb8   :  { %230 = vst [vmem:[%s512_s3 + $0xc0] sm:$0xff] %v115_v6 }
  0xb9   :  { %231 = vst [vmem:[%s512_s3 + $0xc8] sm:$0xff] %v144_v8 }
  0xbb   :  { %v172_v9 = vpop.f32.mrf.mxu2 }
  0xbc   :  { %v173_v10 = vadd.f32 %v172_v9, %v385_v23  ;;  %v201_v11 = vpop.f32.mrf.mxu3  ;;  %v116_v12 = vpop.f32.mrf.mxu0 }
  0xbd   :  { %v202_v13 = vadd.f32 %v201_v11, %v387_v24  ;;  %v117_v14 = vadd.f32 %v116_v12, %v373_v17  ;;  %v145_v15 = vpop.f32.mrf.mxu1 }
  0xbe   :  { %232 = vst [vmem:[%s512_s3 + $0xd0] sm:$0xff] %v173_v10  ;;  %v146_v16 = vadd.f32 %v145_v15, %v375_v18 }
  0xbf   :  { %233 = vst [vmem:[%s512_s3 + $0xd8] sm:$0xff] %v202_v13 }
  0xc0   :  { %234 = vst [vmem:[%s512_s3 + $0xe0] sm:$0xff] %v117_v14 }
  0xc1   :  { %235 = vst [vmem:[%s512_s3 + $0xe8] sm:$0xff] %v146_v16 }
  0xc3   :  { %v174_v17 = vpop.f32.mrf.mxu2 }
  0xc4   :  { %v175_v19 = vadd.f32 %v174_v17, %v385_v23  ;;  %v203_v20 = vpop.f32.mrf.mxu3 }
  0xc5   :  { %v204_v21 = vadd.f32 %v203_v20, %v387_v24 }
  0xc6   :  { %236 = vst [vmem:[%s512_s3 + $0xf0] sm:$0xff] %v175_v19 }
  0xc7   :  { %237 = vst [vmem:[%s512_s3 + $0xf8] sm:$0xff] %v204_v21 }

// kernel: lstm_forward.4
= control target key start
LH: loop header
LB: loop body
LE: loop exit
PB: predicated region body
PF: predicated region fallthrough
CT: control target
= control target key end

     0   :  { %s2213_s1 = inlined_call_operand.vmem [shape: bf16[128,512], index: 1, kind: input, shape index: {}]   ;;  %s2214_s0 = inlined_call_operand.vmem [shape: f32[8,8,512], index: 0, kind: input, shape index: {}]   ;;  %s2215_s2 = inlined_call_operand.vmem [shape: f32[8,128], index: 2, kind: output, shape index: {}]  }
   0x1   :  { %v1331_v0 = vld [vmem:[%s2213_s1 + $0xe0] sm:$0xf]  ;;  %v1427_v1 = vld [vmem:[%s2213_s1 + $0xec] sm:$0xf0]  ;;  %v1425_v2 = vld [vmem:[%s2213_s1 + $0xe4] sm:$0xf] }
   0x2   :  { %v1583_v3 = vor.u32 %v1427_v1, %v1331_v0  ;;  %v1333_v4 = vld [vmem:[%s2213_s1 + $0xf0] sm:$0xf0]  ;;  %v1426_v5 = vld [vmem:[%s2213_s1 + $0xec] sm:$0xf]  ;;  %v1341_v6 = vld [vmem:[%s2213_s1 + $0xf8] sm:$0xf0] }
   0x3   :  { %v1594_v7 = vor.u32 %v1425_v2, %v1333_v4  ;;  %v1596_v8 = vor.u32 %v1426_v5, %v1341_v6  ;;  %v1315_v9 = vld [vmem:[%s2213_s1 + $0xc0] sm:$0xf]  ;;  %v1423_v10 = vld [vmem:[%s2213_s1 + $0xcc] sm:$0xf0]  ;;  %v1421_v11 = vld [vmem:[%s2213_s1 + $0xc4] sm:$0xf] }
   0x4   :  { %216 = vmatpush.bf16.msra.mxu0 %v1583_v3  ;;  %v1608_v12 = vor.u32 %v1423_v10, %v1315_v9  ;;  %v1317_v13 = vld [vmem:[%s2213_s1 + $0xd0] sm:$0xf0]  ;;  %v1422_v14 = vld [vmem:[%s2213_s1 + $0xcc] sm:$0xf]  ;;  %v1325_v15 = vld [vmem:[%s2213_s1 + $0xd8] sm:$0xf0] }
   0x5   :  { %229 = vmatpush.bf16.msra.mxu1 %v1594_v7  ;;  %255 = vmatpush.bf16.msra.mxu3 %v1596_v8  ;;  %v1621_v16 = vor.u32 %v1421_v11, %v1317_v13  ;;  %v1623_v17 = vor.u32 %v1422_v14, %v1325_v15  ;;  %v1339_v18 = vld [vmem:[%s2213_s1 + $0xe8] sm:$0xf]  ;;  %v1428_v19 = vld [vmem:[%s2213_s1 + $0xf4] sm:$0xf0]  ;;  %v1299_v20 = vld [vmem:[%s2213_s1 + $0xa0] sm:$0xf] }
   0x6   :  { %v1634_v21 = vor.u32 %v1428_v19, %v1339_v18  ;;  %v1419_v22 = vld [vmem:[%s2213_s1 + $0xac] sm:$0xf0]  ;;  %v1417_v23 = vld [vmem:[%s2213_s1 + $0xa4] sm:$0xf]  ;;  %v1301_v24 = vld [vmem:[%s2213_s1 + $0xb0] sm:$0xf0] }
   0x7   :  { %v1418_v25 = vld [vmem:[%s2213_s1 + $0xac] sm:$0xf]  ;;  %v1309_v26 = vld [vmem:[%s2213_s1 + $0xb8] sm:$0xf0]  ;;  %v1323_v27 = vld [vmem:[%s2213_s1 + $0xc8] sm:$0xf]  ;;  %v1656_v28 = vor.u32 %v1419_v22, %v1299_v20  ;;  %v1669_v32 = vor.u32 %v1417_v23, %v1301_v24 }
   0x8   :  { %217 = vmatpush.bf16.msra.mxu0 %v1608_v12  ;;  %242 = vmatpush.bf16.msra.mxu2 %v1634_v21  ;;  %v1424_v29 = vld [vmem:[%s2213_s1 + $0xd4] sm:$0xf0]  ;;  %v1283_v30 = vld [vmem:[%s2213_s1 + $0x80] sm:$0xf]  ;;  %v1415_v31 = vld [vmem:[%s2213_s1 + $0x8c] sm:$0xf0]  ;;  %v1671_v33 = vor.u32 %v1418_v25, %v1309_v26 }
   0x9   :  { %230 = vmatpush.bf16.msra.mxu1 %v1621_v16  ;;  %256 = vmatpush.bf16.msra.mxu3 %v1623_v17  ;;  %v1673_v34 = vor.u32 %v1424_v29, %v1323_v27  ;;  %v1413_v35 = vld [vmem:[%s2213_s1 + $0x84] sm:$0xf]  ;;  %v1285_v36 = vld [vmem:[%s2213_s1 + $0x90] sm:$0xf0]  ;;  %v1414_v37 = vld [vmem:[%s2213_s1 + $0x8c] sm:$0xf]  ;;  %v1695_v41 = vor.u32 %v1415_v31, %v1283_v30 }
   0xa   :  { %v1293_v38 = vld [vmem:[%s2213_s1 + $0x98] sm:$0xf0]  ;;  %v1307_v39 = vld [vmem:[%s2213_s1 + $0xa8] sm:$0xf]  ;;  %v1420_v40 = vld [vmem:[%s2213_s1 + $0xb4] sm:$0xf0]  ;;  %v1707_v45 = vor.u32 %v1413_v35, %v1285_v36 }
   0xb   :  { %v1697_v42 = vor.u32 %v1420_v40, %v1307_v39  ;;  %v1267_v43 = vld [vmem:[%s2213_s1 + $0x60] sm:$0xf]  ;;  %v1411_v44 = vld [vmem:[%s2213_s1 + $0x6c] sm:$0xf0]  ;;  %v1709_v46 = vor.u32 %v1414_v37, %v1293_v38  ;;  %v1409_v47 = vld [vmem:[%s2213_s1 + $0x64] sm:$0xf] }
   0xc   :  { %218 = vmatpush.bf16.msra.mxu0 %v1656_v28  ;;  %243 = vmatpush.bf16.msra.mxu2 %v1673_v34  ;;  %v1291_v48 = vld [vmem:[%s2213_s1 + $0x88] sm:$0xf]  ;;  %v1416_v49 = vld [vmem:[%s2213_s1 + $0x94] sm:$0xf0]  ;;  %v1269_v50 = vld [vmem:[%s2213_s1 + $0x70] sm:$0xf0]  ;;  %v1731_v53 = vor.u32 %v1411_v44, %v1267_v43 }
   0xd   :  { %231 = vmatpush.bf16.msra.mxu1 %v1669_v32  ;;  %257 = vmatpush.bf16.msra.mxu3 %v1671_v33  ;;  %v1410_v51 = vld [vmem:[%s2213_s1 + $0x6c] sm:$0xf]  ;;  %v1277_v52 = vld [vmem:[%s2213_s1 + $0x78] sm:$0xf0]  ;;  %v1733_v54 = vor.u32 %v1416_v49, %v1291_v48  ;;  %v1251_v55 = vld [vmem:[%s2213_s1 + $0x40] sm:$0xf]  ;;  %v1743_v57 = vor.u32 %v1409_v47, %v1269_v50 }
   0xe   :  { %v1407_v56 = vld [vmem:[%s2213_s1 + $0x4c] sm:$0xf0]  ;;  %v1745_v58 = vor.u32 %v1410_v51, %v1277_v52  ;;  %v1405_v59 = vld [vmem:[%s2213_s1 + $0x44] sm:$0xf]  ;;  %v1275_v60 = vld [vmem:[%s2213_s1 + $0x68] sm:$0xf] }
   0xf   :  { %v1412_v61 = vld [vmem:[%s2213_s1 + $0x74] sm:$0xf0]  ;;  %v1253_v62 = vld [vmem:[%s2213_s1 + $0x50] sm:$0xf0]  ;;  %v1406_v63 = vld [vmem:[%s2213_s1 + $0x4c] sm:$0xf]  ;;  %v1767_v1 = vor.u32 %v1407_v56, %v1251_v55 }
  0x10   :  { %219 = vmatpush.bf16.msra.mxu0 %v1695_v41  ;;  %244 = vmatpush.bf16.msra.mxu2 %v1697_v42  ;;  %v1261_v0 = vld [vmem:[%s2213_s1 + $0x58] sm:$0xf0]  ;;  %v1769_v2 = vor.u32 %v1412_v61, %v1275_v60  ;;  %v1235_v4 = vld [vmem:[%s2213_s1 + $0x20] sm:$0xf]  ;;  %v1403_v5 = vld [vmem:[%s2213_s1 + $0x2c] sm:$0xf0]  ;;  %v1779_v6 = vor.u32 %v1405_v59, %v1253_v62 }
  0x11   :  { %232 = vmatpush.bf16.msra.mxu1 %v1707_v45  ;;  %258 = vmatpush.bf16.msra.mxu3 %v1709_v46  ;;  %v1781_v9 = vor.u32 %v1406_v63, %v1261_v0  ;;  %v1401_v10 = vld [vmem:[%s2213_s1 + $0x24] sm:$0xf]  ;;  %v1259_v11 = vld [vmem:[%s2213_s1 + $0x48] sm:$0xf]  ;;  %v1408_v13 = vld [vmem:[%s2213_s1 + $0x54] sm:$0xf0]  ;;  %v1803_v19 = vor.u32 %v1403_v5, %v1235_v4 }
  0x12   :  { %v1237_v14 = vld [vmem:[%s2213_s1 + $0x30] sm:$0xf0]  ;;  %v1402_v15 = vld [vmem:[%s2213_s1 + $0x2c] sm:$0xf]  ;;  %v1245_v18 = vld [vmem:[%s2213_s1 + $0x38] sm:$0xf0]  ;;  %v1805_v20 = vor.u32 %v1408_v13, %v1259_v11 }
  0x13   :  { %v1219_v22 = vld [vmem:[%s2213_s1] sm:$0xf]  ;;  %v1399_v23 = vld [vmem:[%s2213_s1 + $0xc] sm:$0xf0]  ;;  %v1815_v24 = vor.u32 %v1401_v10, %v1237_v14  ;;  %v1817_v25 = vor.u32 %v1402_v15, %v1245_v18  ;;  %v1397_v26 = vld [vmem:[%s2213_s1 + $0x4] sm:$0xf] }
  0x14   :  { %220 = vmatpush.bf16.msra.mxu0 %v1731_v53  ;;  %245 = vmatpush.bf16.msra.mxu2 %v1733_v54  ;;  %v1243_v27 = vld [vmem:[%s2213_s1 + $0x28] sm:$0xf]  ;;  %v1404_v29 = vld [vmem:[%s2213_s1 + $0x34] sm:$0xf0]  ;;  %v1221_v30 = vld [vmem:[%s2213_s1 + $0x10] sm:$0xf0]  ;;  %v1839_v36 = vor.u32 %v1399_v23, %v1219_v22 }
  0x15   :  { %233 = vmatpush.bf16.msra.mxu1 %v1743_v57  ;;  %259 = vmatpush.bf16.msra.mxu3 %v1745_v58  ;;  %v1398_v31 = vld [vmem:[%s2213_s1 + $0xc] sm:$0xf]  ;;  %v1229_v35 = vld [vmem:[%s2213_s1 + $0x18] sm:$0xf0]  ;;  %v1841_v37 = vor.u32 %v1404_v29, %v1243_v27  ;;  %v1845_v38 = vor.u32 %v1397_v26, %v1221_v30  ;;  %v1227_v40 = vld [vmem:[%s2213_s1 + $0x8] sm:$0xf] }
  0x16   :  { %v1847_v39 = vor.u32 %v1398_v31, %v1229_v35  ;;  %v1400_v43 = vld [vmem:[%s2213_s1 + $0x14] sm:$0xf0]  ;;  %v1558_v47 = vmov 0.0|0.0   ;;  %v19_v48 = vld [vmem:[%s2214_s0] sm:$0xff]  ;;  %v20_v49 = vld [vmem:[%s2214_s0 + $0x8] sm:$0xff] }
  0x17   :  { %v1859_v44 = vor.u32 %v1400_v43, %v1227_v40  ;;  %v22_v60 = vld [vmem:[%s2214_s0 + $0x18] sm:$0xff]  ;;  %v21_v15 = vld [vmem:[%s2214_s0 + $0x10] sm:$0xff] }
  0x18   :  { %221 = vmatpush.bf16.msra.mxu0 %v1767_v1  ;;  %246 = vmatpush.bf16.msra.mxu2 %v1769_v2 }
  0x19   :  { %234 = vmatpush.bf16.msra.mxu1 %v1779_v6  ;;  %260 = vmatpush.bf16.msra.mxu3 %v1781_v9 }
  0x1c   :  { %222 = vmatpush.bf16.msra.mxu0 %v1803_v19  ;;  %247 = vmatpush.bf16.msra.mxu2 %v1805_v20 }
  0x1d   :  { %235 = vmatpush.bf16.msra.mxu1 %v1815_v24  ;;  %261 = vmatpush.bf16.msra.mxu3 %v1817_v25 }
  0x20   :  { %223 = vmatpush.bf16.msra.mxu0 %v1839_v36  ;;  %248 = vmatpush.bf16.msra.mxu2 %v1841_v37 }
  0x21   :  { %236 = vmatpush.bf16.msra.mxu1 %v1845_v38  ;;  %262 = vmatpush.bf16.msra.mxu3 %v1847_v39 }
  0x23   :  { %224 = vmatmul.bf16.vlgmr.msra.gmra.mxu0 %v1558_v47 }
  0x24   :  { %341 = vmatpush.bf16.msrb.mxu0 %v1583_v3  ;;  %237 = vmatmul.bf16.vlgmr.msra.gmra.mxu1 %v1558_v47 }
  0x25   :  { %354 = vmatpush.bf16.msrb.mxu1 %v1594_v7  ;;  %380 = vmatpush.bf16.msrb.mxu3 %v1596_v8 }
  0x26   :  { %263 = vmatmul.bf16.vlgmr.msra.gmra.mxu3 %v1558_v47  ;;  %249 = vmatpush.bf16.msra.mxu2 %v1859_v44 }
  0x28   :  { %342 = vmatpush.bf16.msrb.mxu0 %v1608_v12 }
  0x29   :  { %355 = vmatpush.bf16.msrb.mxu1 %v1621_v16  ;;  %381 = vmatpush.bf16.msrb.mxu3 %v1623_v17 }
  0x2a   :  { %367 = vmatpush.bf16.msrb.mxu2 %v1634_v21 }
  0x2b   :  { %250 = vmatmul.bf16.vlgmr.msra.gmra.mxu2 %v1558_v47 }
  0x2c   :  { %343 = vmatpush.bf16.msrb.mxu0 %v1656_v28 }
  0x2d   :  { %356 = vmatpush.bf16.msrb.mxu1 %v1669_v32  ;;  %382 = vmatpush.bf16.msrb.mxu3 %v1671_v33 }
  0x2e   :  { %368 = vmatpush.bf16.msrb.mxu2 %v1673_v34 }
  0x30   :  { %344 = vmatpush.bf16.msrb.mxu0 %v1695_v41 }
  0x31   :  { %357 = vmatpush.bf16.msrb.mxu1 %v1707_v45  ;;  %383 = vmatpush.bf16.msrb.mxu3 %v1709_v46 }
  0x32   :  { %369 = vmatpush.bf16.msrb.mxu2 %v1697_v42 }
  0x34   :  { %345 = vmatpush.bf16.msrb.mxu0 %v1731_v53 }
  0x35   :  { %358 = vmatpush.bf16.msrb.mxu1 %v1743_v57  ;;  %384 = vmatpush.bf16.msrb.mxu3 %v1745_v58 }
  0x36   :  { %370 = vmatpush.bf16.msrb.mxu2 %v1733_v54 }
  0x38   :  { %346 = vmatpush.bf16.msrb.mxu0 %v1767_v1 }
  0x39   :  { %359 = vmatpush.bf16.msrb.mxu1 %v1779_v6  ;;  %385 = vmatpush.bf16.msrb.mxu3 %v1781_v9 }
  0x3a   :  { %371 = vmatpush.bf16.msrb.mxu2 %v1769_v2 }
  0x3c   :  { %347 = vmatpush.bf16.msrb.mxu0 %v1803_v19 }
  0x3d   :  { %360 = vmatpush.bf16.msrb.mxu1 %v1815_v24  ;;  %386 = vmatpush.bf16.msrb.mxu3 %v1817_v25 }
  0x3e   :  { %372 = vmatpush.bf16.msrb.mxu2 %v1805_v20 }
  0x40   :  { %348 = vmatpush.bf16.msrb.mxu0 %v1839_v36 }
  0x41   :  { %361 = vmatpush.bf16.msrb.mxu1 %v1845_v38  ;;  %387 = vmatpush.bf16.msrb.mxu3 %v1847_v39 }
  0x42   :  { %373 = vmatpush.bf16.msrb.mxu2 %v1841_v37 }
  0x44   :  { %466 = vmatpush.bf16.msra.mxu0 %v1583_v3 }
  0x45   :  { %479 = vmatpush.bf16.msra.mxu1 %v1594_v7  ;;  %505 = vmatpush.bf16.msra.mxu3 %v1596_v8 }
  0x46   :  { %374 = vmatpush.bf16.msrb.mxu2 %v1859_v44 }
  0x48   :  { %467 = vmatpush.bf16.msra.mxu0 %v1608_v12 }
  0x49   :  { %480 = vmatpush.bf16.msra.mxu1 %v1621_v16  ;;  %506 = vmatpush.bf16.msra.mxu3 %v1623_v17 }
  0x4a   :  { %492 = vmatpush.bf16.msra.mxu2 %v1634_v21 }
  0x4c   :  { %468 = vmatpush.bf16.msra.mxu0 %v1656_v28 }
  0x4d   :  { %481 = vmatpush.bf16.msra.mxu1 %v1669_v32  ;;  %507 = vmatpush.bf16.msra.mxu3 %v1671_v33 }
  0x4e   :  { %493 = vmatpush.bf16.msra.mxu2 %v1673_v34 }
  0x50   :  { %469 = vmatpush.bf16.msra.mxu0 %v1695_v41 }
  0x51   :  { %482 = vmatpush.bf16.msra.mxu1 %v1707_v45  ;;  %508 = vmatpush.bf16.msra.mxu3 %v1709_v46 }
  0x52   :  { %494 = vmatpush.bf16.msra.mxu2 %v1697_v42 }
  0x54   :  { %470 = vmatpush.bf16.msra.mxu0 %v1731_v53 }
  0x55   :  { %483 = vmatpush.bf16.msra.mxu1 %v1743_v57  ;;  %509 = vmatpush.bf16.msra.mxu3 %v1745_v58 }
  0x56   :  { %495 = vmatpush.bf16.msra.mxu2 %v1733_v54 }
  0x58   :  { %471 = vmatpush.bf16.msra.mxu0 %v1767_v1 }
  0x59   :  { %484 = vmatpush.bf16.msra.mxu1 %v1779_v6  ;;  %510 = vmatpush.bf16.msra.mxu3 %v1781_v9 }
  0x5a   :  { %496 = vmatpush.bf16.msra.mxu2 %v1769_v2 }
  0x5c   :  { %472 = vmatpush.bf16.msra.mxu0 %v1803_v19 }
  0x5d   :  { %485 = vmatpush.bf16.msra.mxu1 %v1815_v24  ;;  %511 = vmatpush.bf16.msra.mxu3 %v1817_v25 }
  0x5e   :  { %497 = vmatpush.bf16.msra.mxu2 %v1805_v20 }
  0x60   :  { %473 = vmatpush.bf16.msra.mxu0 %v1839_v36 }
  0x61   :  { %486 = vmatpush.bf16.msra.mxu1 %v1845_v38  ;;  %512 = vmatpush.bf16.msra.mxu3 %v1847_v39 }
  0x62   :  { %498 = vmatpush.bf16.msra.mxu2 %v1841_v37 }
  0x66   :  { %499 = vmatpush.bf16.msra.mxu2 %v1859_v44 }
  0xa0   :  { %v225_v50 = vpop.f32.mrf.mxu0 }
  0xa1   :  { %v268_v51 = vadd.f32 %v225_v50, %v19_v48  ;;  %v238_v52 = vpop.f32.mrf.mxu1 }
  0xa2   :  { %v269_v55 = vadd.f32 %v238_v52, %v20_v49 }
  0xa3   :  { %v1345_v56 = vmul.f32 -1.442695, %v268_v51 }
  0xa4   :  { %v1346_v59 = vmul.f32 -1.442695, %v269_v55 }
  0xa5   :  { %1430 = vpow2.f32 %v1345_v56 }
  0xa6   :  { %1432 = vpow2.f32 %v1346_v59 }
  0xa8   :  { %v227_v63 = vpop.f32.mrf.mxu0 }
  0xa9   :  { %v264_v61 = vpop.f32.mrf.mxu3  ;;  %v240_v0 = vpop.f32.mrf.mxu1 }
  0xaa   :  { %v271_v62 = vadd.f32 %v264_v61, %v22_v60 }
  0xab   :  { %v1431_v5 = vpop.eup %1430 }
  0xac   :  { %v1347_v4 = vmul.f32 -1.442695, %v271_v62  ;;  %v1433_v11 = vpop.eup %1432  ;;  %v275_v13 = vadd.f32 1.0, %v1431_v5 }
  0xad   :  { %v294_v14 = vadd.f32 1.0, %v1433_v11 }
  0xae   :  { %v251_v10 = vpop.f32.mrf.mxu2  ;;  %1434 = vpow2.f32 %v1347_v4  ;;  %v287_v47 = vand.u32 2147483648, %v275_v13  ;;  %v285_v50 = vand.u32 2147483647, %v275_v13  ;;  %vm281_vm2 = vweird.f32 %v275_v13 }
  0xaf   :  { %1436 = vrcp.f32 %v275_v13  ;;  %v270_v23 = vadd.f32 %v251_v10, %v21_v15  ;;  %v306_v48 = vand.u32 2147483648, %v294_v14  ;;  %v304_v52 = vand.u32 2147483647, %v294_v14 }
  0xb0   :  { %1438 = vrcp.f32 %v294_v14  ;;  %vm300_vm3 = vweird.f32 %v294_v14  ;;  %v288_v61 = vor.u32 1.1754944e-38, %v287_v47  ;;  %vm286_vm5 = vcmp.eq.f32.partialorder %v285_v50, 8.507059e+37  ;;  %v1349_v47 = vld [vmem:[%s2214_s0 + $0x28] sm:$0xff] }
  0xb1   :  { %v266_v18 = vpop.f32.mrf.mxu3  ;;  %v307_v63 = vor.u32 1.1754944e-38, %v306_v48  ;;  %vm305_vm7 = vcmp.eq.f32.partialorder %v304_v52, 8.507059e+37 }
  0xb4   :  { %v1435_v22 = vpop.eup %1434 }
  0xb5   :  { %v314_v26 = vadd.f32 1.0, %v1435_v22  ;;  %v1437_v29 = vpop.eup %1436 }
  0xb6   :  { %v253_v27 = vpop.f32.mrf.mxu2  ;;  %v1439_v30 = vpop.eup %1438  ;;  %v277_v31 = vmul.f32 %v1437_v29, %v275_v13  ;;  %vm282_vm0 = vweird.f32 %v1437_v29 }
  0xb7   :  { %1440 = vrcp.f32 %v314_v26  ;;  %v296_v35 = vmul.f32 %v1439_v30, %v294_v14  ;;  %vm301_vm1 = vweird.f32 %v1439_v30  ;;  %vm283_vm4 = vmor %vm281_vm2, %vm282_vm0  ;;  %v326_v14 = vand.u32 2147483648, %v314_v26 }
  0xb8   :  { %1442 = vtanh.f32 %v270_v23  ;;  %v278_v40 = vsub.f32 1.0, %v277_v31  ;;  %vm302_vm6 = vmor %vm300_vm3, %vm301_vm1  ;;  %vm320_vm9 = vweird.f32 %v314_v26  ;;  %v324_v27 = vand.u32 2147483647, %v314_v26 }
  0xb9   :  { %v297_v43 = vsub.f32 1.0, %v296_v35  ;;  %v327_v31 = vor.u32 1.1754944e-38, %v326_v14 }
  0xba   :  { %v279_v49 = vmul.f32 %v1437_v29, %v278_v40  ;;  %vm325_vm11 = vcmp.eq.f32.partialorder %v324_v27, 8.507059e+37 }
  0xbb   :  { %v298_v51 = vmul.f32 %v1439_v30, %v297_v43 }
  0xbc   :  { %v280_v56 = vadd.f32 %v1437_v29, %v279_v49 }
  0xbd   :  { %v1441_v55 = vpop.eup %1440  ;;  %v299_v62 = vadd.f32 %v1439_v30, %v298_v51 }
  0xbe   :  { %v1443_v59 = vpop.eup %1442  ;;  %v316_v60 = vmul.f32 %v1441_v55, %v314_v26  ;;  %v284_v0 = vsel %vm283_vm4, %v1437_v29, %v280_v56  ;;  %vm321_vm8 = vweird.f32 %v1441_v55  ;;  %v1348_v26 = vld [vmem:[%s2214_s0 + $0x20] sm:$0xff]  ;;  %v1351_v56 = vld [vmem:[%s2214_s0 + $0x38] sm:$0xff] }
  0xbf   :  { %v289_v5 = vsel %vm286_vm5, %v288_v61, %v284_v0  ;;  %v303_v10 = vsel %vm302_vm6, %v1439_v30, %v299_v62  ;;  %vm322_vm10 = vmor %vm320_vm9, %vm321_vm8 }
  0xc0   :  { %v317_v4 = vsub.f32 1.0, %v316_v60  ;;  %v308_v11 = vsel %vm305_vm7, %v307_v63, %v303_v10  ;;  %v331_v15 = vmul.f32 %v1443_v59, %v289_v5 }
  0xc1   :  { %v330_v18 = vmul.f32 0.0, %v308_v11 }
  0xc2   :  { %v318_v22 = vmul.f32 %v1441_v55, %v317_v4 }
  0xc3   :  { %v1938_v23 = vadd.f32 %v331_v15, %v330_v18 }
  0xc4   :  { %v319_v13 = vadd.f32 %v1441_v55, %v318_v22  ;;  %v1350_v22 = vld [vmem:[%s2214_s0 + $0x30] sm:$0xff] }
  0xc5   :  { %1444 = vtanh.f32 %v1938_v23 }
  0xc6   :  { %v323_v29 = vsel %vm322_vm10, %v1441_v55, %v319_v13 }
  0xc7   :  { %v328_v30 = vsel %vm325_vm11, %v327_v31, %v323_v29 }
  0xcb   :  { %v1445_v35 = vpop.eup %1444 }
  0xcc   :  { %v334_v40 = vmul.f32 %v1445_v35, %v328_v30 }
  0xce   :  { %v340_v43 = vpack.c.bf16 %v334_v40, %v334_v40 }
  0xd0   :  { %349 = vmatmul.bf16.vlgmr.msrb.gmra.mxu0 %v340_v43  ;;  %362 = vmatmul.bf16.vlgmr.msrb.gmra.mxu1 %v340_v43 }
  0xd1   :  { %375 = vmatmul.bf16.vlgmr.msrb.gmra.mxu2 %v340_v43  ;;  %388 = vmatmul.bf16.vlgmr.msrb.gmra.mxu3 %v340_v43 }
  0xd2   :  { %591 = vmatpush.bf16.msrb.mxu0 %v1583_v3  ;;  %604 = vmatpush.bf16.msrb.mxu1 %v1594_v7 }
  0xd3   :  { %617 = vmatpush.bf16.msrb.mxu2 %v1634_v21  ;;  %630 = vmatpush.bf16.msrb.mxu3 %v1596_v8 }
  0xd6   :  { %592 = vmatpush.bf16.msrb.mxu0 %v1608_v12  ;;  %605 = vmatpush.bf16.msrb.mxu1 %v1621_v16 }
  0xd7   :  { %618 = vmatpush.bf16.msrb.mxu2 %v1673_v34  ;;  %631 = vmatpush.bf16.msrb.mxu3 %v1623_v17 }
  0xda   :  { %593 = vmatpush.bf16.msrb.mxu0 %v1656_v28  ;;  %606 = vmatpush.bf16.msrb.mxu1 %v1669_v32 }
  0xdb   :  { %619 = vmatpush.bf16.msrb.mxu2 %v1697_v42  ;;  %632 = vmatpush.bf16.msrb.mxu3 %v1671_v33 }
  0xde   :  { %594 = vmatpush.bf16.msrb.mxu0 %v1695_v41  ;;  %607 = vmatpush.bf16.msrb.mxu1 %v1707_v45 }
  0xdf   :  { %620 = vmatpush.bf16.msrb.mxu2 %v1733_v54  ;;  %633 = vmatpush.bf16.msrb.mxu3 %v1709_v46 }
  0xe2   :  { %595 = vmatpush.bf16.msrb.mxu0 %v1731_v53  ;;  %608 = vmatpush.bf16.msrb.mxu1 %v1743_v57 }
  0xe3   :  { %621 = vmatpush.bf16.msrb.mxu2 %v1769_v2  ;;  %634 = vmatpush.bf16.msrb.mxu3 %v1745_v58 }
  0xe6   :  { %596 = vmatpush.bf16.msrb.mxu0 %v1767_v1  ;;  %609 = vmatpush.bf16.msrb.mxu1 %v1779_v6 }
  0xe7   :  { %622 = vmatpush.bf16.msrb.mxu2 %v1805_v20  ;;  %635 = vmatpush.bf16.msrb.mxu3 %v1781_v9 }
  0xea   :  { %597 = vmatpush.bf16.msrb.mxu0 %v1803_v19  ;;  %610 = vmatpush.bf16.msrb.mxu1 %v1815_v24 }
  0xeb   :  { %623 = vmatpush.bf16.msrb.mxu2 %v1841_v37  ;;  %636 = vmatpush.bf16.msrb.mxu3 %v1817_v25 }
  0xee   :  { %598 = vmatpush.bf16.msrb.mxu0 %v1839_v36  ;;  %611 = vmatpush.bf16.msrb.mxu1 %v1845_v38 }
  0xef   :  { %624 = vmatpush.bf16.msrb.mxu2 %v1859_v44  ;;  %637 = vmatpush.bf16.msrb.mxu3 %v1847_v39 }
 0x14d   :  { %v350_v48 = vpop.f32.mrf.mxu0  ;;  %v363_v49 = vpop.f32.mrf.mxu1 }
 0x14e   :  { %v393_v50 = vadd.f32 %v1348_v26, %v350_v48  ;;  %v394_v51 = vadd.f32 %v1349_v47, %v363_v49 }
 0x150   :  { %v1352_v52 = vmul.f32 -1.442695, %v393_v50  ;;  %v1353_v55 = vmul.f32 -1.442695, %v394_v51 }
 0x152   :  { %1446 = vpow2.f32 %v1352_v52 }
 0x153   :  { %1448 = vpow2.f32 %v1353_v55 }
 0x154   :  { %v376_v59 = vpop.f32.mrf.mxu2  ;;  %v389_v60 = vpop.f32.mrf.mxu3 }
 0x155   :  { %v396_v61 = vadd.f32 %v1351_v56, %v389_v60  ;;  %v352_v62 = vpop.f32.mrf.mxu0  ;;  %v365_v63 = vpop.f32.mrf.mxu1  ;;  %v395_v29 = vadd.f32 %v1350_v22, %v376_v59 }
 0x157   :  { %v1354_v0 = vmul.f32 -1.442695, %v396_v61 }
 0x158   :  { %v1447_v4 = vpop.eup %1446 }
 0x159   :  { %v1449_v5 = vpop.eup %1448  ;;  %v400_v10 = vadd.f32 1.0, %v1447_v4  ;;  %1450 = vpow2.f32 %v1354_v0 }
 0x15a   :  { %v419_v11 = vadd.f32 1.0, %v1449_v5 }
 0x15b   :  { %1452 = vrcp.f32 %v400_v10  ;;  %v412_v26 = vand.u32 2147483648, %v400_v10  ;;  %v410_v49 = vand.u32 2147483647, %v400_v10  ;;  %vm406_vm14 = vweird.f32 %v400_v10 }
 0x15c   :  { %1454 = vrcp.f32 %v419_v11  ;;  %v378_v15 = vpop.f32.mrf.mxu2  ;;  %v391_v18 = vpop.f32.mrf.mxu3  ;;  %v431_v47 = vand.u32 2147483648, %v419_v11  ;;  %v429_v51 = vand.u32 2147483647, %v419_v11  ;;  %vm425_vm15 = vweird.f32 %v419_v11 }
 0x15d   :  { %v413_v56 = vor.u32 1.1754944e-38, %v412_v26  ;;  %vm411_vm2 = vcmp.eq.f32.partialorder %v410_v49, 8.507059e+37 }
 0x15e   :  { %v432_v61 = vor.u32 1.1754944e-38, %v431_v47  ;;  %vm430_vm3 = vcmp.eq.f32.partialorder %v429_v51, 8.507059e+37 }
 0x15f   :  { %v1451_v13 = vpop.eup %1450 }
 0x160   :  { %v439_v14 = vadd.f32 1.0, %v1451_v13 }
 0x161   :  { %v1453_v27 = vpop.eup %1452 }
 0x162   :  { %v1455_v31 = vpop.eup %1454  ;;  %v402_v35 = vmul.f32 %v1453_v27, %v400_v10  ;;  %1456 = vrcp.f32 %v439_v14  ;;  %vm407_vm12 = vweird.f32 %v1453_v27  ;;  %vm445_vm5 = vweird.f32 %v439_v14 }
 0x163   :  { %v421_v30 = vmul.f32 %v1455_v31, %v419_v11  ;;  %1458 = vtanh.f32 %v395_v29  ;;  %vm426_vm13 = vweird.f32 %v1455_v31  ;;  %vm408_vm0 = vmor %vm406_vm14, %vm407_vm12  ;;  %v451_v29 = vand.u32 2147483648, %v439_v14 }
 0x164   :  { %v403_v40 = vsub.f32 1.0, %v402_v35  ;;  %vm427_vm1 = vmor %vm425_vm15, %vm426_vm13 }
 0x165   :  { %v422_v43 = vsub.f32 1.0, %v421_v30  ;;  %v452_v30 = vor.u32 1.1754944e-38, %v451_v29 }
 0x166   :  { %v404_v48 = vmul.f32 %v1453_v27, %v403_v40 }
 0x167   :  { %v423_v50 = vmul.f32 %v1455_v31, %v422_v43 }
 0x168   :  { %v1457_v52 = vpop.eup %1456  ;;  %v405_v55 = vadd.f32 %v1453_v27, %v404_v48 }
 0x169   :  { %v424_v59 = vadd.f32 %v1455_v31, %v423_v50  ;;  %v441_v60 = vmul.f32 %v1457_v52, %v439_v14  ;;  %v1459_v63 = vpop.eup %1458  ;;  %vm446_vm4 = vweird.f32 %v1457_v52 }
 0x16a   :  { %v409_v62 = vsel %vm408_vm0, %v1453_v27, %v405_v55  ;;  %v449_v27 = vand.u32 2147483647, %v439_v14  ;;  %vm447_vm6 = vmor %vm445_vm5, %vm446_vm4  ;;  %v1356_v14 = vld [vmem:[%s2214_s0 + $0x48] sm:$0xff]  ;;  %v1358_v55 = vld [vmem:[%s2214_s0 + $0x58] sm:$0xff] }
 0x16b   :  { %v414_v0 = vsel %vm411_vm2, %v413_v56, %v409_v62  ;;  %v428_v4 = vsel %vm427_vm1, %v1455_v31, %v424_v59  ;;  %v442_v5 = vsub.f32 1.0, %v441_v60 }
 0x16c   :  { %v433_v15 = vsel %vm430_vm3, %v432_v61, %v428_v4  ;;  %v456_v18 = vmul.f32 %v1459_v63, %v414_v0  ;;  %vm450_vm7 = vcmp.eq.f32.partialorder %v449_v27, 8.507059e+37 }
 0x16d   :  { %v455_v22 = vmul.f32 %v433_v15, %v1938_v23  ;;  %v443_v13 = vmul.f32 %v1457_v52, %v442_v5  ;;  %v1355_v23 = vld [vmem:[%s2214_s0 + $0x40] sm:$0xff] }
 0x16f   :  { %v1986_v10 = vadd.f32 %v456_v18, %v455_v22  ;;  %v444_v11 = vadd.f32 %v1457_v52, %v443_v13  ;;  %v1357_v13 = vld [vmem:[%s2214_s0 + $0x50] sm:$0xff] }
 0x171   :  { %1460 = vtanh.f32 %v1986_v10  ;;  %v448_v35 = vsel %vm447_vm6, %v1457_v52, %v444_v11 }
 0x172   :  { %v453_v40 = vsel %vm450_vm7, %v452_v30, %v448_v35 }
 0x177   :  { %v1461_v31 = vpop.eup %1460 }
 0x178   :  { %v459_v43 = vmul.f32 %v1461_v31, %v453_v40 }
 0x17a   :  { %v465_v26 = vpack.c.bf16 %v459_v43, %v459_v43 }
 0x17c   :  { %474 = vmatmul.bf16.vlgmr.msra.gmra.mxu0 %v465_v26  ;;  %487 = vmatmul.bf16.vlgmr.msra.gmra.mxu1 %v465_v26 }
 0x17d   :  { %500 = vmatmul.bf16.vlgmr.msra.gmra.mxu2 %v465_v26  ;;  %513 = vmatmul.bf16.vlgmr.msra.gmra.mxu3 %v465_v26 }
 0x17e   :  { %716 = vmatpush.bf16.msra.mxu0 %v1583_v3  ;;  %729 = vmatpush.bf16.msra.mxu1 %v1594_v7 }
 0x17f   :  { %742 = vmatpush.bf16.msra.mxu2 %v1634_v21  ;;  %755 = vmatpush.bf16.msra.mxu3 %v1596_v8 }
 0x182   :  { %717 = vmatpush.bf16.msra.mxu0 %v1608_v12  ;;  %730 = vmatpush.bf16.msra.mxu1 %v1621_v16 }
 0x183   :  { %743 = vmatpush.bf16.msra.mxu2 %v1673_v34  ;;  %756 = vmatpush.bf16.msra.mxu3 %v1623_v17 }
 0x186   :  { %718 = vmatpush.bf16.msra.mxu0 %v1656_v28  ;;  %731 = vmatpush.bf16.msra.mxu1 %v1669_v32 }
 0x187   :  { %744 = vmatpush.bf16.msra.mxu2 %v1697_v42  ;;  %757 = vmatpush.bf16.msra.mxu3 %v1671_v33 }
 0x18a   :  { %719 = vmatpush.bf16.msra.mxu0 %v1695_v41  ;;  %732 = vmatpush.bf16.msra.mxu1 %v1707_v45 }
 0x18b   :  { %745 = vmatpush.bf16.msra.mxu2 %v1733_v54  ;;  %758 = vmatpush.bf16.msra.mxu3 %v1709_v46 }
 0x18e   :  { %720 = vmatpush.bf16.msra.mxu0 %v1731_v53  ;;  %733 = vmatpush.bf16.msra.mxu1 %v1743_v57 }
 0x18f   :  { %746 = vmatpush.bf16.msra.mxu2 %v1769_v2  ;;  %759 = vmatpush.bf16.msra.mxu3 %v1745_v58 }
 0x192   :  { %721 = vmatpush.bf16.msra.mxu0 %v1767_v1  ;;  %734 = vmatpush.bf16.msra.mxu1 %v1779_v6 }
 0x193   :  { %747 = vmatpush.bf16.msra.mxu2 %v1805_v20  ;;  %760 = vmatpush.bf16.msra.mxu3 %v1781_v9 }
 0x196   :  { %722 = vmatpush.bf16.msra.mxu0 %v1803_v19  ;;  %735 = vmatpush.bf16.msra.mxu1 %v1815_v24 }
 0x197   :  { %748 = vmatpush.bf16.msra.mxu2 %v1841_v37  ;;  %761 = vmatpush.bf16.msra.mxu3 %v1817_v25 }
 0x19a   :  { %723 = vmatpush.bf16.msra.mxu0 %v1839_v36  ;;  %736 = vmatpush.bf16.msra.mxu1 %v1845_v38 }
 0x19b   :  { %749 = vmatpush.bf16.msra.mxu2 %v1859_v44  ;;  %762 = vmatpush.bf16.msra.mxu3 %v1847_v39 }
 0x1f9   :  { %v475_v47 = vpop.f32.mrf.mxu0  ;;  %v488_v48 = vpop.f32.mrf.mxu1 }
 0x1fa   :  { %v518_v49 = vadd.f32 %v1355_v23, %v475_v47  ;;  %v519_v50 = vadd.f32 %v1356_v14, %v488_v48 }
 0x1fc   :  { %v1359_v51 = vmul.f32 -1.442695, %v518_v49  ;;  %v1360_v52 = vmul.f32 -1.442695, %v519_v50 }
 0x1fe   :  { %1462 = vpow2.f32 %v1359_v51 }
 0x1ff   :  { %1464 = vpow2.f32 %v1360_v52 }
 0x200   :  { %v501_v56 = vpop.f32.mrf.mxu2  ;;  %v514_v59 = vpop.f32.mrf.mxu3 }
 0x201   :  { %v521_v60 = vadd.f32 %v1358_v55, %v514_v59  ;;  %v477_v61 = vpop.f32.mrf.mxu0  ;;  %v490_v62 = vpop.f32.mrf.mxu1  ;;  %v520_v35 = vadd.f32 %v1357_v13, %v501_v56 }
 0x203   :  { %v1361_v63 = vmul.f32 -1.442695, %v521_v60 }
 0x204   :  { %v1463_v0 = vpop.eup %1462 }
 0x205   :  { %v1465_v4 = vpop.eup %1464  ;;  %v525_v5 = vadd.f32 1.0, %v1463_v0  ;;  %1466 = vpow2.f32 %v1361_v63 }
 0x206   :  { %v544_v15 = vadd.f32 1.0, %v1465_v4 }
 0x207   :  { %1468 = vrcp.f32 %v525_v5  ;;  %v537_v23 = vand.u32 2147483648, %v525_v5  ;;  %v535_v48 = vand.u32 2147483647, %v525_v5  ;;  %vm531_vm10 = vweird.f32 %v525_v5 }
 0x208   :  { %1470 = vrcp.f32 %v544_v15  ;;  %v503_v18 = vpop.f32.mrf.mxu2  ;;  %v516_v22 = vpop.f32.mrf.mxu3  ;;  %v556_v14 = vand.u32 2147483648, %v544_v15  ;;  %v554_v50 = vand.u32 2147483647, %v544_v15  ;;  %vm550_vm11 = vweird.f32 %v544_v15 }
 0x209   :  { %v538_v55 = vor.u32 1.1754944e-38, %v537_v23  ;;  %vm536_vm14 = vcmp.eq.f32.partialorder %v535_v48, 8.507059e+37 }
 0x20a   :  { %v557_v60 = vor.u32 1.1754944e-38, %v556_v14  ;;  %vm555_vm15 = vcmp.eq.f32.partialorder %v554_v50, 8.507059e+37 }
 0x20b   :  { %v1467_v11 = vpop.eup %1466 }
 0x20c   :  { %v564_v29 = vadd.f32 1.0, %v1467_v11 }
 0x20d   :  { %v1469_v27 = vpop.eup %1468 }
 0x20e   :  { %v1471_v30 = vpop.eup %1470  ;;  %v527_v31 = vmul.f32 %v1469_v27, %v525_v5  ;;  %1472 = vrcp.f32 %v564_v29  ;;  %vm532_vm8 = vweird.f32 %v1469_v27  ;;  %vm570_vm1 = vweird.f32 %v564_v29 }
 0x20f   :  { %v546_v40 = vmul.f32 %v1471_v30, %v544_v15  ;;  %1474 = vtanh.f32 %v520_v35  ;;  %vm551_vm9 = vweird.f32 %v1471_v30  ;;  %vm533_vm12 = vmor %vm531_vm10, %vm532_vm8  ;;  %v576_v35 = vand.u32 2147483648, %v564_v29 }
 0x210   :  { %v528_v43 = vsub.f32 1.0, %v527_v31  ;;  %vm552_vm13 = vmor %vm550_vm11, %vm551_vm9 }
 0x211   :  { %v547_v26 = vsub.f32 1.0, %v546_v40  ;;  %v577_v40 = vor.u32 1.1754944e-38, %v576_v35 }
 0x212   :  { %v529_v47 = vmul.f32 %v1469_v27, %v528_v43 }
 0x213   :  { %v548_v49 = vmul.f32 %v1471_v30, %v547_v26 }
 0x214   :  { %v1473_v51 = vpop.eup %1472  ;;  %v530_v52 = vadd.f32 %v1469_v27, %v529_v47 }
 0x215   :  { %v549_v56 = vadd.f32 %v1471_v30, %v548_v49  ;;  %v566_v59 = vmul.f32 %v1473_v51, %v564_v29  ;;  %v1475_v62 = vpop.eup %1474  ;;  %vm571_vm0 = vweird.f32 %v1473_v51 }
 0x216   :  { %v534_v61 = vsel %vm533_vm12, %v1469_v27, %v530_v52  ;;  %v574_v27 = vand.u32 2147483647, %v564_v29  ;;  %vm572_vm2 = vmor %vm570_vm1, %vm571_vm0  ;;  %v1363_v29 = vld [vmem:[%s2214_s0 + $0x68] sm:$0xff]  ;;  %v1365_v52 = vld [vmem:[%s2214_s0 + $0x78] sm:$0xff] }
 0x217   :  { %v539_v63 = vsel %vm536_vm14, %v538_v55, %v534_v61  ;;  %v553_v0 = vsel %vm552_vm13, %v1471_v30, %v549_v56  ;;  %v567_v4 = vsub.f32 1.0, %v566_v59 }
 0x218   :  { %v558_v18 = vsel %vm555_vm15, %v557_v60, %v553_v0  ;;  %v581_v22 = vmul.f32 %v1475_v62, %v539_v63  ;;  %vm575_vm3 = vcmp.eq.f32.partialorder %v574_v27, 8.507059e+37 }
 0x219   :  { %v580_v13 = vmul.f32 %v558_v18, %v1986_v10  ;;  %v568_v11 = vmul.f32 %v1473_v51, %v567_v4  ;;  %v1362_v10 = vld [vmem:[%s2214_s0 + $0x60] sm:$0xff] }
 0x21b   :  { %v2034_v5 = vadd.f32 %v581_v22, %v580_v13  ;;  %v569_v15 = vadd.f32 %v1473_v51, %v568_v11  ;;  %v1364_v11 = vld [vmem:[%s2214_s0 + $0x70] sm:$0xff] }
 0x21d   :  { %1476 = vtanh.f32 %v2034_v5  ;;  %v573_v31 = vsel %vm572_vm2, %v1473_v51, %v569_v15 }
 0x21e   :  { %v578_v43 = vsel %vm575_vm3, %v577_v40, %v573_v31 }
 0x223   :  { %v1477_v30 = vpop.eup %1476 }
 0x224   :  { %v584_v26 = vmul.f32 %v1477_v30, %v578_v43 }
 0x226   :  { %v590_v23 = vpack.c.bf16 %v584_v26, %v584_v26 }
 0x228   :  { %599 = vmatmul.bf16.vlgmr.msrb.gmra.mxu0 %v590_v23  ;;  %612 = vmatmul.bf16.vlgmr.msrb.gmra.mxu1 %v590_v23 }
 0x229   :  { %625 = vmatmul.bf16.vlgmr.msrb.gmra.mxu2 %v590_v23  ;;  %638 = vmatmul.bf16.vlgmr.msrb.gmra.mxu3 %v590_v23 }
 0x22a   :  { %841 = vmatpush.bf16.msrb.mxu0 %v1583_v3  ;;  %854 = vmatpush.bf16.msrb.mxu1 %v1594_v7 }
 0x22b   :  { %867 = vmatpush.bf16.msrb.mxu2 %v1634_v21  ;;  %880 = vmatpush.bf16.msrb.mxu3 %v1596_v8 }
 0x22e   :  { %842 = vmatpush.bf16.msrb.mxu0 %v1608_v12  ;;  %855 = vmatpush.bf16.msrb.mxu1 %v1621_v16 }
 0x22f   :  { %868 = vmatpush.bf16.msrb.mxu2 %v1673_v34  ;;  %881 = vmatpush.bf16.msrb.mxu3 %v1623_v17 }
 0x232   :  { %843 = vmatpush.bf16.msrb.mxu0 %v1656_v28  ;;  %856 = vmatpush.bf16.msrb.mxu1 %v1669_v32 }
 0x233   :  { %869 = vmatpush.bf16.msrb.mxu2 %v1697_v42  ;;  %882 = vmatpush.bf16.msrb.mxu3 %v1671_v33 }
 0x236   :  { %844 = vmatpush.bf16.msrb.mxu0 %v1695_v41  ;;  %857 = vmatpush.bf16.msrb.mxu1 %v1707_v45 }
 0x237   :  { %870 = vmatpush.bf16.msrb.mxu2 %v1733_v54  ;;  %883 = vmatpush.bf16.msrb.mxu3 %v1709_v46 }
 0x23a   :  { %845 = vmatpush.bf16.msrb.mxu0 %v1731_v53  ;;  %858 = vmatpush.bf16.msrb.mxu1 %v1743_v57 }
 0x23b   :  { %871 = vmatpush.bf16.msrb.mxu2 %v1769_v2  ;;  %884 = vmatpush.bf16.msrb.mxu3 %v1745_v58 }
 0x23e   :  { %846 = vmatpush.bf16.msrb.mxu0 %v1767_v1  ;;  %859 = vmatpush.bf16.msrb.mxu1 %v1779_v6 }
 0x23f   :  { %872 = vmatpush.bf16.msrb.mxu2 %v1805_v20  ;;  %885 = vmatpush.bf16.msrb.mxu3 %v1781_v9 }
 0x242   :  { %847 = vmatpush.bf16.msrb.mxu0 %v1803_v19  ;;  %860 = vmatpush.bf16.msrb.mxu1 %v1815_v24 }
 0x243   :  { %873 = vmatpush.bf16.msrb.mxu2 %v1841_v37  ;;  %886 = vmatpush.bf16.msrb.mxu3 %v1817_v25 }
 0x246   :  { %848 = vmatpush.bf16.msrb.mxu0 %v1839_v36  ;;  %861 = vmatpush.bf16.msrb.mxu1 %v1845_v38 }
 0x247   :  { %874 = vmatpush.bf16.msrb.mxu2 %v1859_v44  ;;  %887 = vmatpush.bf16.msrb.mxu3 %v1847_v39 }
 0x2a5   :  { %v600_v14 = vpop.f32.mrf.mxu0  ;;  %v613_v47 = vpop.f32.mrf.mxu1 }
 0x2a6   :  { %v643_v48 = vadd.f32 %v1362_v10, %v600_v14  ;;  %v644_v49 = vadd.f32 %v1363_v29, %v613_v47 }
 0x2a8   :  { %v1366_v50 = vmul.f32 -1.442695, %v643_v48  ;;  %v1367_v51 = vmul.f32 -1.442695, %v644_v49 }
 0x2aa   :  { %1478 = vpow2.f32 %v1366_v50 }
 0x2ab   :  { %1480 = vpow2.f32 %v1367_v51 }
 0x2ac   :  { %v626_v55 = vpop.f32.mrf.mxu2  ;;  %v639_v56 = vpop.f32.mrf.mxu3 }
 0x2ad   :  { %v646_v59 = vadd.f32 %v1365_v52, %v639_v56  ;;  %v602_v60 = vpop.f32.mrf.mxu0  ;;  %v615_v61 = vpop.f32.mrf.mxu1  ;;  %v645_v31 = vadd.f32 %v1364_v11, %v626_v55 }
 0x2af   :  { %v1368_v62 = vmul.f32 -1.442695, %v646_v59 }
 0x2b0   :  { %v1479_v63 = vpop.eup %1478 }
 0x2b1   :  { %v1481_v0 = vpop.eup %1480  ;;  %v650_v4 = vadd.f32 1.0, %v1479_v63  ;;  %1482 = vpow2.f32 %v1368_v62 }
 0x2b2   :  { %v669_v18 = vadd.f32 1.0, %v1481_v0 }
 0x2b3   :  { %1484 = vrcp.f32 %v650_v4  ;;  %v662_v10 = vand.u32 2147483648, %v650_v4  ;;  %v660_v47 = vand.u32 2147483647, %v650_v4  ;;  %vm656_vm6 = vweird.f32 %v650_v4 }
 0x2b4   :  { %1486 = vrcp.f32 %v669_v18  ;;  %v628_v22 = vpop.f32.mrf.mxu2  ;;  %v641_v13 = vpop.f32.mrf.mxu3  ;;  %v681_v29 = vand.u32 2147483648, %v669_v18  ;;  %v679_v49 = vand.u32 2147483647, %v669_v18  ;;  %vm675_vm7 = vweird.f32 %v669_v18 }
 0x2b5   :  { %v663_v52 = vor.u32 1.1754944e-38, %v662_v10  ;;  %vm661_vm10 = vcmp.eq.f32.partialorder %v660_v47, 8.507059e+37 }
 0x2b6   :  { %v682_v59 = vor.u32 1.1754944e-38, %v681_v29  ;;  %vm680_vm11 = vcmp.eq.f32.partialorder %v679_v49, 8.507059e+37 }
 0x2b7   :  { %v1483_v15 = vpop.eup %1482 }
 0x2b8   :  { %v689_v35 = vadd.f32 1.0, %v1483_v15 }
 0x2b9   :  { %v1485_v27 = vpop.eup %1484 }
 0x2ba   :  { %v1487_v40 = vpop.eup %1486  ;;  %v652_v30 = vmul.f32 %v1485_v27, %v650_v4  ;;  %1488 = vrcp.f32 %v689_v35  ;;  %vm657_vm4 = vweird.f32 %v1485_v27  ;;  %vm695_vm13 = vweird.f32 %v689_v35 }
 0x2bb   :  { %v671_v43 = vmul.f32 %v1487_v40, %v669_v18  ;;  %1490 = vtanh.f32 %v645_v31  ;;  %vm676_vm5 = vweird.f32 %v1487_v40  ;;  %vm658_vm8 = vmor %vm656_vm6, %vm657_vm4  ;;  %v701_v31 = vand.u32 2147483648, %v689_v35 }
 0x2bc   :  { %v653_v26 = vsub.f32 1.0, %v652_v30  ;;  %vm677_vm9 = vmor %vm675_vm7, %vm676_vm5 }
 0x2bd   :  { %v672_v23 = vsub.f32 1.0, %v671_v43  ;;  %v702_v43 = vor.u32 1.1754944e-38, %v701_v31 }
 0x2be   :  { %v654_v14 = vmul.f32 %v1485_v27, %v653_v26 }
 0x2bf   :  { %v673_v48 = vmul.f32 %v1487_v40, %v672_v23 }
 0x2c0   :  { %v1489_v50 = vpop.eup %1488  ;;  %v655_v51 = vadd.f32 %v1485_v27, %v654_v14 }
 0x2c1   :  { %v674_v55 = vadd.f32 %v1487_v40, %v673_v48  ;;  %v691_v56 = vmul.f32 %v1489_v50, %v689_v35  ;;  %v1491_v61 = vpop.eup %1490  ;;  %vm696_vm12 = vweird.f32 %v1489_v50 }
 0x2c2   :  { %v659_v60 = vsel %vm658_vm8, %v1485_v27, %v655_v51  ;;  %v699_v27 = vand.u32 2147483647, %v689_v35  ;;  %vm697_vm14 = vmor %vm695_vm13, %vm696_vm12  ;;  %v1370_v35 = vld [vmem:[%s2214_s0 + $0x88] sm:$0xff]  ;;  %v1372_v51 = vld [vmem:[%s2214_s0 + $0x98] sm:$0xff] }
 0x2c3   :  { %v664_v62 = vsel %vm661_vm10, %v663_v52, %v659_v60  ;;  %v678_v63 = vsel %vm677_vm9, %v1487_v40, %v674_v55  ;;  %v692_v0 = vsub.f32 1.0, %v691_v56 }
 0x2c4   :  { %v683_v22 = vsel %vm680_vm11, %v682_v59, %v678_v63  ;;  %v706_v13 = vmul.f32 %v1491_v61, %v664_v62  ;;  %vm700_vm15 = vcmp.eq.f32.partialorder %v699_v27, 8.507059e+37 }
 0x2c5   :  { %v705_v11 = vmul.f32 %v683_v22, %v2034_v5  ;;  %v693_v15 = vmul.f32 %v1489_v50, %v692_v0  ;;  %v1369_v5 = vld [vmem:[%s2214_s0 + $0x80] sm:$0xff] }
 0x2c7   :  { %v2082_v4 = vadd.f32 %v706_v13, %v705_v11  ;;  %v694_v18 = vadd.f32 %v1489_v50, %v693_v15  ;;  %v1371_v15 = vld [vmem:[%s2214_s0 + $0x90] sm:$0xff] }
 0x2c9   :  { %1492 = vtanh.f32 %v2082_v4  ;;  %v698_v30 = vsel %vm697_vm14, %v1489_v50, %v694_v18 }
 0x2ca   :  { %v703_v26 = vsel %vm700_vm15, %v702_v43, %v698_v30 }
 0x2cf   :  { %v1493_v40 = vpop.eup %1492 }
 0x2d0   :  { %v709_v23 = vmul.f32 %v1493_v40, %v703_v26 }
 0x2d2   :  { %v715_v10 = vpack.c.bf16 %v709_v23, %v709_v23 }
 0x2d4   :  { %724 = vmatmul.bf16.vlgmr.msra.gmra.mxu0 %v715_v10  ;;  %737 = vmatmul.bf16.vlgmr.msra.gmra.mxu1 %v715_v10 }
 0x2d5   :  { %750 = vmatmul.bf16.vlgmr.msra.gmra.mxu2 %v715_v10  ;;  %763 = vmatmul.bf16.vlgmr.msra.gmra.mxu3 %v715_v10 }
 0x2d6   :  { %966 = vmatpush.bf16.msra.mxu0 %v1583_v3  ;;  %979 = vmatpush.bf16.msra.mxu1 %v1594_v7 }
 0x2d7   :  { %992 = vmatpush.bf16.msra.mxu2 %v1634_v21  ;;  %1005 = vmatpush.bf16.msra.mxu3 %v1596_v8 }
 0x2da   :  { %967 = vmatpush.bf16.msra.mxu0 %v1608_v12  ;;  %980 = vmatpush.bf16.msra.mxu1 %v1621_v16 }
 0x2db   :  { %993 = vmatpush.bf16.msra.mxu2 %v1673_v34  ;;  %1006 = vmatpush.bf16.msra.mxu3 %v1623_v17 }
 0x2de   :  { %968 = vmatpush.bf16.msra.mxu0 %v1656_v28  ;;  %981 = vmatpush.bf16.msra.mxu1 %v1669_v32 }
 0x2df   :  { %994 = vmatpush.bf16.msra.mxu2 %v1697_v42  ;;  %1007 = vmatpush.bf16.msra.mxu3 %v1671_v33 }
 0x2e2   :  { %969 = vmatpush.bf16.msra.mxu0 %v1695_v41  ;;  %982 = vmatpush.bf16.msra.mxu1 %v1707_v45 }
 0x2e3   :  { %995 = vmatpush.bf16.msra.mxu2 %v1733_v54  ;;  %1008 = vmatpush.bf16.msra.mxu3 %v1709_v46 }
 0x2e6   :  { %970 = vmatpush.bf16.msra.mxu0 %v1731_v53  ;;  %983 = vmatpush.bf16.msra.mxu1 %v1743_v57 }
 0x2e7   :  { %996 = vmatpush.bf16.msra.mxu2 %v1769_v2  ;;  %1009 = vmatpush.bf16.msra.mxu3 %v1745_v58 }
 0x2ea   :  { %971 = vmatpush.bf16.msra.mxu0 %v1767_v1  ;;  %984 = vmatpush.bf16.msra.mxu1 %v1779_v6 }
 0x2eb   :  { %997 = vmatpush.bf16.msra.mxu2 %v1805_v20  ;;  %1010 = vmatpush.bf16.msra.mxu3 %v1781_v9 }
 0x2ee   :  { %972 = vmatpush.bf16.msra.mxu0 %v1803_v19  ;;  %985 = vmatpush.bf16.msra.mxu1 %v1815_v24 }
 0x2ef   :  { %998 = vmatpush.bf16.msra.mxu2 %v1841_v37  ;;  %1011 = vmatpush.bf16.msra.mxu3 %v1817_v25 }
 0x2f2   :  { %973 = vmatpush.bf16.msra.mxu0 %v1839_v36  ;;  %986 = vmatpush.bf16.msra.mxu1 %v1845_v38 }
 0x2f3   :  { %999 = vmatpush.bf16.msra.mxu2 %v1859_v44  ;;  %1012 = vmatpush.bf16.msra.mxu3 %v1847_v39 }
 0x351   :  { %v725_v29 = vpop.f32.mrf.mxu0  ;;  %v738_v14 = vpop.f32.mrf.mxu1 }
 0x352   :  { %v768_v47 = vadd.f32 %v1369_v5, %v725_v29  ;;  %v769_v48 = vadd.f32 %v1370_v35, %v738_v14 }
 0x354   :  { %v1373_v49 = vmul.f32 -1.442695, %v768_v47  ;;  %v1374_v50 = vmul.f32 -1.442695, %v769_v48 }
 0x356   :  { %1494 = vpow2.f32 %v1373_v49 }
 0x357   :  { %1496 = vpow2.f32 %v1374_v50 }
 0x358   :  { %v751_v52 = vpop.f32.mrf.mxu2  ;;  %v764_v55 = vpop.f32.mrf.mxu3 }
 0x359   :  { %v771_v56 = vadd.f32 %v1372_v51, %v764_v55  ;;  %v727_v59 = vpop.f32.mrf.mxu0  ;;  %v740_v60 = vpop.f32.mrf.mxu1  ;;  %v770_v30 = vadd.f32 %v1371_v15, %v751_v52 }
 0x35b   :  { %v1375_v61 = vmul.f32 -1.442695, %v771_v56 }
 0x35c   :  { %v1495_v62 = vpop.eup %1494 }
 0x35d   :  { %v1497_v63 = vpop.eup %1496  ;;  %v775_v0 = vadd.f32 1.0, %v1495_v62  ;;  %1498 = vpow2.f32 %v1375_v61 }
 0x35e   :  { %v794_v22 = vadd.f32 1.0, %v1497_v63 }
 0x35f   :  { %1500 = vrcp.f32 %v775_v0  ;;  %v787_v5 = vand.u32 2147483648, %v775_v0  ;;  %v785_v14 = vand.u32 2147483647, %v775_v0  ;;  %vm781_vm2 = vweird.f32 %v775_v0 }
 0x360   :  { %1502 = vrcp.f32 %v794_v22  ;;  %v753_v13 = vpop.f32.mrf.mxu2  ;;  %v766_v11 = vpop.f32.mrf.mxu3  ;;  %v806_v35 = vand.u32 2147483648, %v794_v22  ;;  %v804_v48 = vand.u32 2147483647, %v794_v22  ;;  %vm800_vm3 = vweird.f32 %v794_v22 }
 0x361   :  { %v788_v51 = vor.u32 1.1754944e-38, %v787_v5  ;;  %vm786_vm6 = vcmp.eq.f32.partialorder %v785_v14, 8.507059e+37 }
 0x362   :  { %v807_v56 = vor.u32 1.1754944e-38, %v806_v35  ;;  %vm805_vm7 = vcmp.eq.f32.partialorder %v804_v48, 8.507059e+37 }
 0x363   :  { %v1499_v18 = vpop.eup %1498 }
 0x364   :  { %v814_v31 = vadd.f32 1.0, %v1499_v18 }
 0x365   :  { %v1501_v27 = vpop.eup %1500 }
 0x366   :  { %v1503_v43 = vpop.eup %1502  ;;  %v777_v40 = vmul.f32 %v1501_v27, %v775_v0  ;;  %1504 = vrcp.f32 %v814_v31  ;;  %vm782_vm0 = vweird.f32 %v1501_v27  ;;  %vm820_vm9 = vweird.f32 %v814_v31 }
 0x367   :  { %v796_v26 = vmul.f32 %v1503_v43, %v794_v22  ;;  %1506 = vtanh.f32 %v770_v30  ;;  %vm801_vm1 = vweird.f32 %v1503_v43  ;;  %vm783_vm4 = vmor %vm781_vm2, %vm782_vm0  ;;  %v826_v30 = vand.u32 2147483648, %v814_v31 }
 0x368   :  { %v778_v23 = vsub.f32 1.0, %v777_v40  ;;  %vm802_vm5 = vmor %vm800_vm3, %vm801_vm1 }
 0x369   :  { %v797_v10 = vsub.f32 1.0, %v796_v26  ;;  %v827_v26 = vor.u32 1.1754944e-38, %v826_v30 }
 0x36a   :  { %v779_v29 = vmul.f32 %v1501_v27, %v778_v23 }
 0x36b   :  { %v798_v47 = vmul.f32 %v1503_v43, %v797_v10 }
 0x36c   :  { %v1505_v49 = vpop.eup %1504  ;;  %v780_v50 = vadd.f32 %v1501_v27, %v779_v29 }
 0x36d   :  { %v799_v52 = vadd.f32 %v1503_v43, %v798_v47  ;;  %v816_v55 = vmul.f32 %v1505_v49, %v814_v31  ;;  %v1507_v60 = vpop.eup %1506  ;;  %vm821_vm8 = vweird.f32 %v1505_v49 }
 0x36e   :  { %v784_v59 = vsel %vm783_vm4, %v1501_v27, %v780_v50  ;;  %v824_v27 = vand.u32 2147483647, %v814_v31  ;;  %vm822_vm10 = vmor %vm820_vm9, %vm821_vm8 }
 0x36f   :  { %v789_v61 = vsel %vm786_vm6, %v788_v51, %v784_v59  ;;  %v803_v62 = vsel %vm802_vm5, %v1503_v43, %v799_v52  ;;  %v817_v63 = vsub.f32 1.0, %v816_v55 }
 0x370   :  { %v808_v13 = vsel %vm805_vm7, %v807_v56, %v803_v62  ;;  %v831_v11 = vmul.f32 %v1507_v60, %v789_v61  ;;  %vm825_vm11 = vcmp.eq.f32.partialorder %v824_v27, 8.507059e+37 }
 0x371   :  { %v830_v15 = vmul.f32 %v808_v13, %v2082_v4  ;;  %v818_v18 = vmul.f32 %v1505_v49, %v817_v63 }
 0x373   :  { %v2130_v0 = vadd.f32 %v831_v11, %v830_v15  ;;  %v819_v22 = vadd.f32 %v1505_v49, %v818_v18 }
 0x375   :  { %1508 = vtanh.f32 %v2130_v0  ;;  %v823_v40 = vsel %vm822_vm10, %v1505_v49, %v819_v22 }
 0x376   :  { %v828_v23 = vsel %vm825_vm11, %v827_v26, %v823_v40 }
 0x37b   :  { %v1509_v43 = vpop.eup %1508 }
 0x37c   :  { %v834_v10 = vmul.f32 %v1509_v43, %v828_v23 }
 0x37e   :  { %v840_v5 = vpack.c.bf16 %v834_v10, %v834_v10 }
 0x380   :  { %849 = vmatmul.bf16.vlgmr.msrb.gmra.mxu0 %v840_v5  ;;  %862 = vmatmul.bf16.vlgmr.msrb.gmra.mxu1 %v840_v5 }
 0x381   :  { %875 = vmatmul.bf16.vlgmr.msrb.gmra.mxu2 %v840_v5  ;;  %888 = vmatmul.bf16.vlgmr.msrb.gmra.mxu3 %v840_v5  ;;  %v1384_v5 = vld [vmem:[%s2214_s0 + $0xc8] sm:$0xff] }
 0x382   :  { %1091 = vmatpush.bf16.msrb.mxu0 %v1583_v3  ;;  %1104 = vmatpush.bf16.msrb.mxu1 %v1594_v7  ;;  %v1376_v3 = vld [vmem:[%s2214_s0 + $0xa0] sm:$0xff]  ;;  %v1377_v7 = vld [vmem:[%s2214_s0 + $0xa8] sm:$0xff] }
 0x383   :  { %1117 = vmatpush.bf16.msrb.mxu2 %v1634_v21  ;;  %1130 = vmatpush.bf16.msrb.mxu3 %v1596_v8 }
 0x386   :  { %1092 = vmatpush.bf16.msrb.mxu0 %v1608_v12  ;;  %1105 = vmatpush.bf16.msrb.mxu1 %v1621_v16 }
 0x387   :  { %1118 = vmatpush.bf16.msrb.mxu2 %v1673_v34  ;;  %1131 = vmatpush.bf16.msrb.mxu3 %v1623_v17 }
 0x38a   :  { %1093 = vmatpush.bf16.msrb.mxu0 %v1656_v28  ;;  %1106 = vmatpush.bf16.msrb.mxu1 %v1669_v32  ;;  %v1379_v32 = vld [vmem:[%s2214_s0 + $0xb8] sm:$0xff] }
 0x38b   :  { %1119 = vmatpush.bf16.msrb.mxu2 %v1697_v42  ;;  %1132 = vmatpush.bf16.msrb.mxu3 %v1671_v33 }
 0x38e   :  { %1094 = vmatpush.bf16.msrb.mxu0 %v1695_v41  ;;  %1107 = vmatpush.bf16.msrb.mxu1 %v1707_v45 }
 0x38f   :  { %1120 = vmatpush.bf16.msrb.mxu2 %v1733_v54  ;;  %1133 = vmatpush.bf16.msrb.mxu3 %v1709_v46 }
 0x392   :  { %1095 = vmatpush.bf16.msrb.mxu0 %v1731_v53  ;;  %1108 = vmatpush.bf16.msrb.mxu1 %v1743_v57 }
 0x393   :  { %1121 = vmatpush.bf16.msrb.mxu2 %v1769_v2  ;;  %1134 = vmatpush.bf16.msrb.mxu3 %v1745_v58 }
 0x396   :  { %1096 = vmatpush.bf16.msrb.mxu0 %v1767_v1  ;;  %1109 = vmatpush.bf16.msrb.mxu1 %v1779_v6  ;;  %v1378_v6 = vld [vmem:[%s2214_s0 + $0xb0] sm:$0xff] }
 0x397   :  { %1122 = vmatpush.bf16.msrb.mxu2 %v1805_v20  ;;  %1135 = vmatpush.bf16.msrb.mxu3 %v1781_v9 }
 0x39a   :  { %1097 = vmatpush.bf16.msrb.mxu0 %v1803_v19  ;;  %1110 = vmatpush.bf16.msrb.mxu1 %v1815_v24 }
 0x39b   :  { %1123 = vmatpush.bf16.msrb.mxu2 %v1841_v37  ;;  %1136 = vmatpush.bf16.msrb.mxu3 %v1817_v25 }
 0x39e   :  { %1098 = vmatpush.bf16.msrb.mxu0 %v1839_v36  ;;  %1111 = vmatpush.bf16.msrb.mxu1 %v1845_v38 }
 0x39f   :  { %1124 = vmatpush.bf16.msrb.mxu2 %v1859_v44  ;;  %1137 = vmatpush.bf16.msrb.mxu3 %v1847_v39 }
 0x3fd   :  { %v850_v8 = vpop.f32.mrf.mxu0  ;;  %v863_v12 = vpop.f32.mrf.mxu1 }
 0x3fe   :  { %v893_v16 = vadd.f32 %v1376_v3, %v850_v8  ;;  %v894_v17 = vadd.f32 %v1377_v7, %v863_v12 }
 0x400   :  { %v1380_v21 = vmul.f32 -1.442695, %v893_v16  ;;  %v1381_v28 = vmul.f32 -1.442695, %v894_v17 }
 0x402   :  { %1510 = vpow2.f32 %v1380_v21  ;;  %v1386_v21 = vld [vmem:[%s2214_s0 + $0xd8] sm:$0xff] }
 0x403   :  { %1512 = vpow2.f32 %v1381_v28 }
 0x404   :  { %v876_v33 = vpop.f32.mrf.mxu2  ;;  %v889_v34 = vpop.f32.mrf.mxu3 }
 0x405   :  { %v896_v41 = vadd.f32 %v1379_v32, %v889_v34  ;;  %v852_v42 = vpop.f32.mrf.mxu0  ;;  %v865_v45 = vpop.f32.mrf.mxu1  ;;  %v895_v24 = vadd.f32 %v1378_v6, %v876_v33 }
 0x407   :  { %v1382_v46 = vmul.f32 -1.442695, %v896_v41 }
 0x408   :  { %v1511_v53 = vpop.eup %1510 }
 0x409   :  { %v1513_v54 = vpop.eup %1512  ;;  %v900_v57 = vadd.f32 1.0, %v1511_v53  ;;  %1514 = vpow2.f32 %v1382_v46 }
 0x40a   :  { %v919_v58 = vadd.f32 1.0, %v1513_v54 }
 0x40b   :  { %1516 = vrcp.f32 %v900_v57  ;;  %v912_v44 = vand.u32 2147483648, %v900_v57  ;;  %v910_v35 = vand.u32 2147483647, %v900_v57  ;;  %vm906_vm14 = vweird.f32 %v900_v57 }
 0x40c   :  { %1518 = vrcp.f32 %v919_v58  ;;  %v878_v1 = vpop.f32.mrf.mxu2  ;;  %v891_v2 = vpop.f32.mrf.mxu3  ;;  %v931_v4 = vand.u32 2147483648, %v919_v58  ;;  %v929_v14 = vand.u32 2147483647, %v919_v58  ;;  %vm925_vm15 = vweird.f32 %v919_v58 }
 0x40d   :  { %v913_v49 = vor.u32 1.1754944e-38, %v912_v44  ;;  %vm911_vm2 = vcmp.eq.f32.partialorder %v910_v35, 8.507059e+37  ;;  %v1385_v1 = vld [vmem:[%s2214_s0 + $0xd0] sm:$0xff] }
 0x40e   :  { %v932_v52 = vor.u32 1.1754944e-38, %v931_v4  ;;  %vm930_vm3 = vcmp.eq.f32.partialorder %v929_v14, 8.507059e+37 }
 0x40f   :  { %v1515_v9 = vpop.eup %1514 }
 0x410   :  { %v939_v19 = vadd.f32 1.0, %v1515_v9 }
 0x411   :  { %v1517_v20 = vpop.eup %1516 }
 0x412   :  { %v1519_v25 = vpop.eup %1518  ;;  %v902_v36 = vmul.f32 %v1517_v20, %v900_v57  ;;  %1520 = vrcp.f32 %v939_v19  ;;  %vm907_vm12 = vweird.f32 %v1517_v20  ;;  %v951_v22 = vand.u32 2147483648, %v939_v19 }
 0x413   :  { %v921_v37 = vmul.f32 %v1519_v25, %v919_v58  ;;  %1522 = vtanh.f32 %v895_v24  ;;  %vm926_vm13 = vweird.f32 %v1519_v25  ;;  %vm908_vm0 = vmor %vm906_vm14, %vm907_vm12  ;;  %vm945_vm5 = vweird.f32 %v939_v19 }
 0x414   :  { %v903_v38 = vsub.f32 1.0, %v902_v36  ;;  %vm927_vm1 = vmor %vm925_vm15, %vm926_vm13  ;;  %v949_v30 = vand.u32 2147483647, %v939_v19  ;;  %v952_v40 = vor.u32 1.1754944e-38, %v951_v22 }
 0x415   :  { %v922_v39 = vsub.f32 1.0, %v921_v37 }
 0x416   :  { %v904_v31 = vmul.f32 %v1517_v20, %v903_v38  ;;  %vm950_vm7 = vcmp.eq.f32.partialorder %v949_v30, 8.507059e+37 }
 0x417   :  { %v923_v29 = vmul.f32 %v1519_v25, %v922_v39 }
 0x418   :  { %v1521_v47 = vpop.eup %1520  ;;  %v905_v48 = vadd.f32 %v1517_v20, %v904_v31 }
 0x419   :  { %v924_v50 = vadd.f32 %v1519_v25, %v923_v29  ;;  %v941_v51 = vmul.f32 %v1521_v47, %v939_v19  ;;  %v1523_v56 = vpop.eup %1522  ;;  %vm946_vm4 = vweird.f32 %v1521_v47 }
 0x41a   :  { %v909_v55 = vsel %vm908_vm0, %v1517_v20, %v905_v48  ;;  %vm947_vm6 = vmor %vm945_vm5, %vm946_vm4 }
 0x41b   :  { %v914_v59 = vsel %vm911_vm2, %v913_v49, %v909_v55  ;;  %v928_v60 = vsel %vm927_vm1, %v1519_v25, %v924_v50  ;;  %v942_v61 = vsub.f32 1.0, %v941_v51 }
 0x41c   :  { %v933_v62 = vsel %vm930_vm3, %v932_v52, %v928_v60  ;;  %v956_v63 = vmul.f32 %v1523_v56, %v914_v59 }
 0x41d   :  { %v955_v13 = vmul.f32 %v933_v62, %v2130_v0  ;;  %v943_v11 = vmul.f32 %v1521_v47, %v942_v61  ;;  %v1383_v0 = vld [vmem:[%s2214_s0 + $0xc0] sm:$0xff] }
 0x41f   :  { %v2178_v15 = vadd.f32 %v956_v63, %v955_v13  ;;  %v944_v18 = vadd.f32 %v1521_v47, %v943_v11 }
 0x421   :  { %1524 = vtanh.f32 %v2178_v15  ;;  %v948_v27 = vsel %vm947_vm6, %v1521_v47, %v944_v18 }
 0x422   :  { %v953_v43 = vsel %vm950_vm7, %v952_v40, %v948_v27 }
 0x427   :  { %v1525_v26 = vpop.eup %1524 }
 0x428   :  { %v959_v23 = vmul.f32 %v1525_v26, %v953_v43 }
 0x42a   :  { %v965_v10 = vpack.c.bf16 %v959_v23, %v959_v23 }
 0x42c   :  { %974 = vmatmul.bf16.vlgmr.msra.gmra.mxu0 %v965_v10  ;;  %987 = vmatmul.bf16.vlgmr.msra.gmra.mxu1 %v965_v10 }
 0x42d   :  { %1000 = vmatmul.bf16.vlgmr.msra.gmra.mxu2 %v965_v10  ;;  %1013 = vmatmul.bf16.vlgmr.msra.gmra.mxu3 %v965_v10  ;;  %v1391_v10 = vld [vmem:[%s2214_s0 + $0xe8] sm:$0xff] }
 0x4a9   :  { %v975_v3 = vpop.f32.mrf.mxu0  ;;  %v988_v7 = vpop.f32.mrf.mxu1 }
 0x4aa   :  { %v1018_v8 = vadd.f32 %v1383_v0, %v975_v3  ;;  %v1019_v12 = vadd.f32 %v1384_v5, %v988_v7 }
 0x4ac   :  { %v1387_v16 = vmul.f32 -1.442695, %v1018_v8  ;;  %v1388_v17 = vmul.f32 -1.442695, %v1019_v12 }
 0x4ae   :  { %1526 = vpow2.f32 %v1387_v16  ;;  %v1393_v16 = vld [vmem:[%s2214_s0 + $0xf8] sm:$0xff] }
 0x4af   :  { %1528 = vpow2.f32 %v1388_v17 }
 0x4b0   :  { %v1001_v28 = vpop.f32.mrf.mxu2  ;;  %v1014_v32 = vpop.f32.mrf.mxu3 }
 0x4b1   :  { %v1021_v33 = vadd.f32 %v1386_v21, %v1014_v32  ;;  %v977_v34 = vpop.f32.mrf.mxu0  ;;  %v990_v41 = vpop.f32.mrf.mxu1  ;;  %v1020_v19 = vadd.f32 %v1385_v1, %v1001_v28 }
 0x4b3   :  { %v1389_v42 = vmul.f32 -1.442695, %v1021_v33 }
 0x4b4   :  { %v1527_v45 = vpop.eup %1526 }
 0x4b5   :  { %v1529_v46 = vpop.eup %1528  ;;  %v1025_v53 = vadd.f32 1.0, %v1527_v45  ;;  %1530 = vpow2.f32 %v1389_v42 }
 0x4b6   :  { %v1044_v54 = vadd.f32 1.0, %v1529_v46 }
 0x4b7   :  { %1532 = vrcp.f32 %v1025_v53  ;;  %v1037_v38 = vand.u32 2147483648, %v1025_v53  ;;  %v1035_v4 = vand.u32 2147483647, %v1025_v53  ;;  %vm1031_vm10 = vweird.f32 %v1025_v53 }
 0x4b8   :  { %1534 = vrcp.f32 %v1044_v54  ;;  %v1003_v57 = vpop.f32.mrf.mxu2  ;;  %v1016_v58 = vpop.f32.mrf.mxu3  ;;  %v1056_v39 = vand.u32 2147483648, %v1044_v54  ;;  %v1054_v35 = vand.u32 2147483647, %v1044_v54  ;;  %vm1050_vm11 = vweird.f32 %v1044_v54 }
 0x4b9   :  { %v1038_v47 = vor.u32 1.1754944e-38, %v1037_v38  ;;  %vm1036_vm14 = vcmp.eq.f32.partialorder %v1035_v4, 8.507059e+37  ;;  %v1392_v57 = vld [vmem:[%s2214_s0 + $0xf0] sm:$0xff] }
 0x4ba   :  { %v1057_v50 = vor.u32 1.1754944e-38, %v1056_v39  ;;  %vm1055_vm15 = vcmp.eq.f32.partialorder %v1054_v35, 8.507059e+37 }
 0x4bb   :  { %v1531_v2 = vpop.eup %1530 }
 0x4bc   :  { %v1064_v6 = vadd.f32 1.0, %v1531_v2 }
 0x4bd   :  { %v1533_v9 = vpop.eup %1532 }
 0x4be   :  { %v1535_v20 = vpop.eup %1534  ;;  %v1027_v24 = vmul.f32 %v1533_v9, %v1025_v53  ;;  %1536 = vrcp.f32 %v1064_v6  ;;  %vm1032_vm8 = vweird.f32 %v1533_v9  ;;  %v1076_v18 = vand.u32 2147483648, %v1064_v6 }
 0x4bf   :  { %v1046_v25 = vmul.f32 %v1535_v20, %v1044_v54  ;;  %1538 = vtanh.f32 %v1020_v19  ;;  %vm1051_vm9 = vweird.f32 %v1535_v20  ;;  %vm1033_vm12 = vmor %vm1031_vm10, %vm1032_vm8  ;;  %vm1070_vm1 = vweird.f32 %v1064_v6 }
 0x4c0   :  { %v1028_v36 = vsub.f32 1.0, %v1027_v24  ;;  %vm1052_vm13 = vmor %vm1050_vm11, %vm1051_vm9  ;;  %v1074_v22 = vand.u32 2147483647, %v1064_v6  ;;  %v1077_v27 = vor.u32 1.1754944e-38, %v1076_v18 }
 0x4c1   :  { %v1047_v37 = vsub.f32 1.0, %v1046_v25 }
 0x4c2   :  { %v1029_v44 = vmul.f32 %v1533_v9, %v1028_v36  ;;  %vm1075_vm3 = vcmp.eq.f32.partialorder %v1074_v22, 8.507059e+37 }
 0x4c3   :  { %v1048_v31 = vmul.f32 %v1535_v20, %v1047_v37 }
 0x4c4   :  { %v1537_v29 = vpop.eup %1536  ;;  %v1030_v14 = vadd.f32 %v1533_v9, %v1029_v44 }
 0x4c5   :  { %v1049_v48 = vadd.f32 %v1535_v20, %v1048_v31  ;;  %v1066_v49 = vmul.f32 %v1537_v29, %v1064_v6  ;;  %v1539_v52 = vpop.eup %1538  ;;  %vm1071_vm0 = vweird.f32 %v1537_v29 }
 0x4c6   :  { %v1034_v51 = vsel %vm1033_vm12, %v1533_v9, %v1030_v14  ;;  %vm1072_vm2 = vmor %vm1070_vm1, %vm1071_vm0 }
 0x4c7   :  { %v1039_v55 = vsel %vm1036_vm14, %v1038_v47, %v1034_v51  ;;  %v1053_v56 = vsel %vm1052_vm13, %v1535_v20, %v1049_v48  ;;  %v1067_v59 = vsub.f32 1.0, %v1066_v49 }
 0x4c8   :  { %v1058_v60 = vsel %vm1055_vm15, %v1057_v50, %v1053_v56  ;;  %v1081_v61 = vmul.f32 %v1539_v52, %v1039_v55 }
 0x4c9   :  { %v1080_v62 = vmul.f32 %v1058_v60, %v2178_v15  ;;  %v1068_v63 = vmul.f32 %v1537_v29, %v1067_v59  ;;  %v1390_v15 = vld [vmem:[%s2214_s0 + $0xe0] sm:$0xff] }
 0x4cb   :  { %v2194_v13 = vadd.f32 %v1081_v61, %v1080_v62  ;;  %v1069_v11 = vadd.f32 %v1537_v29, %v1068_v63 }
 0x4cd   :  { %1540 = vtanh.f32 %v2194_v13  ;;  %v1073_v30 = vsel %vm1072_vm2, %v1537_v29, %v1069_v11 }
 0x4ce   :  { %v1078_v26 = vsel %vm1075_vm3, %v1077_v27, %v1073_v30 }
 0x4d3   :  { %v1541_v40 = vpop.eup %1540 }
 0x4d4   :  { %v1084_v43 = vmul.f32 %v1541_v40, %v1078_v26 }
 0x4d6   :  { %v1090_v23 = vpack.c.bf16 %v1084_v43, %v1084_v43 }
 0x4d8   :  { %1099 = vmatmul.bf16.vlgmr.msrb.gmra.mxu0 %v1090_v23  ;;  %1112 = vmatmul.bf16.vlgmr.msrb.gmra.mxu1 %v1090_v23 }
 0x4d9   :  { %1125 = vmatmul.bf16.vlgmr.msrb.gmra.mxu2 %v1090_v23  ;;  %1138 = vmatmul.bf16.vlgmr.msrb.gmra.mxu3 %v1090_v23 }
 0x555   :  { %v1100_v0 = vpop.f32.mrf.mxu0  ;;  %v1113_v5 = vpop.f32.mrf.mxu1 }
 0x556   :  { %v1143_v3 = vadd.f32 %v1390_v15, %v1100_v0  ;;  %v1144_v7 = vadd.f32 %v1391_v10, %v1113_v5 }
 0x558   :  { %v1394_v8 = vmul.f32 -1.442695, %v1143_v3  ;;  %v1395_v12 = vmul.f32 -1.442695, %v1144_v7 }
 0x55a   :  { %1542 = vpow2.f32 %v1394_v8 }
 0x55b   :  { %1544 = vpow2.f32 %v1395_v12 }
 0x55c   :  { %v1126_v17 = vpop.f32.mrf.mxu2  ;;  %v1139_v21 = vpop.f32.mrf.mxu3 }
 0x55d   :  { %v1146_v28 = vadd.f32 %v1393_v16, %v1139_v21  ;;  %v1102_v32 = vpop.f32.mrf.mxu0  ;;  %v1115_v33 = vpop.f32.mrf.mxu1  ;;  %v1145_v6 = vadd.f32 %v1392_v57, %v1126_v17 }
 0x55f   :  { %v1396_v34 = vmul.f32 -1.442695, %v1146_v28 }
 0x560   :  { %v1543_v41 = vpop.eup %1542 }
 0x561   :  { %v1545_v42 = vpop.eup %1544  ;;  %v1150_v45 = vadd.f32 1.0, %v1543_v41  ;;  %1546 = vpow2.f32 %v1396_v34 }
 0x562   :  { %v1169_v46 = vadd.f32 1.0, %v1545_v42 }
 0x563   :  { %1548 = vrcp.f32 %v1150_v45  ;;  %v1162_v36 = vand.u32 2147483648, %v1150_v45  ;;  %v1160_v39 = vand.u32 2147483647, %v1150_v45  ;;  %vm1156_vm6 = vweird.f32 %v1150_v45 }
 0x564   :  { %1550 = vrcp.f32 %v1169_v46  ;;  %v1128_v53 = vpop.f32.mrf.mxu2  ;;  %v1141_v54 = vpop.f32.mrf.mxu3  ;;  %v1181_v37 = vand.u32 2147483648, %v1169_v46  ;;  %v1179_v4 = vand.u32 2147483647, %v1169_v46  ;;  %vm1175_vm7 = vweird.f32 %v1169_v46 }
 0x565   :  { %v1163_v29 = vor.u32 1.1754944e-38, %v1162_v36  ;;  %vm1161_vm10 = vcmp.eq.f32.partialorder %v1160_v39, 8.507059e+37 }
 0x566   :  { %v1182_v48 = vor.u32 1.1754944e-38, %v1181_v37  ;;  %vm1180_vm11 = vcmp.eq.f32.partialorder %v1179_v4, 8.507059e+37 }
 0x567   :  { %v1547_v58 = vpop.eup %1546 }
 0x568   :  { %v1189_v1 = vadd.f32 1.0, %v1547_v58 }
 0x569   :  { %v1549_v2 = vpop.eup %1548 }
 0x56a   :  { %v1551_v9 = vpop.eup %1550  ;;  %v1152_v19 = vmul.f32 %v1549_v2, %v1150_v45  ;;  %1552 = vrcp.f32 %v1189_v1  ;;  %vm1157_vm4 = vweird.f32 %v1549_v2  ;;  %v1201_v11 = vand.u32 2147483648, %v1189_v1 }
 0x56b   :  { %v1171_v20 = vmul.f32 %v1551_v9, %v1169_v46  ;;  %1554 = vtanh.f32 %v1145_v6  ;;  %vm1176_vm5 = vweird.f32 %v1551_v9  ;;  %vm1158_vm8 = vmor %vm1156_vm6, %vm1157_vm4  ;;  %vm1195_vm13 = vweird.f32 %v1189_v1 }
 0x56c   :  { %v1153_v24 = vsub.f32 1.0, %v1152_v19  ;;  %vm1177_vm9 = vmor %vm1175_vm7, %vm1176_vm5  ;;  %v1199_v18 = vand.u32 2147483647, %v1189_v1  ;;  %v1202_v30 = vor.u32 1.1754944e-38, %v1201_v11 }
 0x56d   :  { %v1172_v25 = vsub.f32 1.0, %v1171_v20 }
 0x56e   :  { %v1154_v38 = vmul.f32 %v1549_v2, %v1153_v24  ;;  %vm1200_vm15 = vcmp.eq.f32.partialorder %v1199_v18, 8.507059e+37 }
 0x56f   :  { %v1173_v44 = vmul.f32 %v1551_v9, %v1172_v25 }
 0x570   :  { %v1553_v31 = vpop.eup %1552  ;;  %v1155_v35 = vadd.f32 %v1549_v2, %v1154_v38 }
 0x571   :  { %v1174_v14 = vadd.f32 %v1551_v9, %v1173_v44  ;;  %v1191_v47 = vmul.f32 %v1553_v31, %v1189_v1  ;;  %v1555_v50 = vpop.eup %1554  ;;  %vm1196_vm12 = vweird.f32 %v1553_v31 }
 0x572   :  { %v1159_v49 = vsel %vm1158_vm8, %v1549_v2, %v1155_v35  ;;  %vm1197_vm14 = vmor %vm1195_vm13, %vm1196_vm12 }
 0x573   :  { %v1164_v51 = vsel %vm1161_vm10, %v1163_v29, %v1159_v49  ;;  %v1178_v52 = vsel %vm1177_vm9, %v1551_v9, %v1174_v14  ;;  %v1192_v55 = vsub.f32 1.0, %v1191_v47 }
 0x574   :  { %v1183_v56 = vsel %vm1180_vm11, %v1182_v48, %v1178_v52  ;;  %v1206_v59 = vmul.f32 %v1555_v50, %v1164_v51 }
 0x575   :  { %v1205_v60 = vmul.f32 %v1183_v56, %v2194_v13  ;;  %v1193_v61 = vmul.f32 %v1553_v31, %v1192_v55 }
 0x577   :  { %v1207_v62 = vadd.f32 %v1206_v59, %v1205_v60  ;;  %v1194_v63 = vadd.f32 %v1553_v31, %v1193_v61 }
 0x579   :  { %1556 = vtanh.f32 %v1207_v62  ;;  %v1198_v22 = vsel %vm1197_vm14, %v1553_v31, %v1194_v63 }
 0x57a   :  { %v1203_v40 = vsel %vm1200_vm15, %v1202_v30, %v1198_v22 }
 0x57f   :  { %v1557_v27 = vpop.eup %1556 }
 0x580   :  { %v1209_v26 = vmul.f32 %v1557_v27, %v1203_v40 }
 0x582   :  { %1212 = vst [vmem:[%s2215_s2] sm:$0xff] %v1209_v26 }

</bundles_post_ra>
